<compile_context>
chip_gen: v6e
topology: v6e:2x2x1
jax: 0.10.0
libtpu: 0.0.40
codegen_flags: <defaults>
</compile_context>

<pallas_src>
import functools

import jax
import jax.numpy as jnp
from jax.experimental import pallas as pl
from jax.experimental.pallas import tpu as pltpu


# ----------------------------------------------------------------------------
# Fused kernel: [LSTM layer]*L (wavefronted) -> last hidden state -> head
# ----------------------------------------------------------------------------
def _fused_lstm_model_kernel(T, B, H, num_layers, x_ref, *refs):
    """x_ref: (B*T, F) batch_first flattened input (row b*T + t = batch b, time t).

    refs = [w_ih_t, w_hh_t, bias] * num_layers + [head_w_t, head_b] + [out_ref]
    Gate order along the 4H axis follows PyTorch: [i, f, g, o].
    """
    n_lw = 3 * num_layers
    w_refs = refs[:n_lw]
    head_w_ref, head_b_ref, out_ref = refs[n_lw:n_lw + 3]

    w_ih = [w_refs[3 * l][...] for l in range(num_layers)]        # (F_in/H, 4H)
    w_hh = [w_refs[3 * l + 1][...] for l in range(num_layers)]    # (H, 4H)
    bias = [w_refs[3 * l + 2][...] for l in range(num_layers)]    # (1, 4H)

    G = 4 * H

    # Hoisted layer-0 input projection: ONE MXU matmul covering every timestep.
    gx0 = jnp.dot(x_ref[...], w_ih[0],
                  preferred_element_type=jnp.float32) + bias[0]   # (B*T, 4H)

    # Per-timestep gate slabs for layer 0, built from unit-stride sublane
    # slices (row b*T + t) + concat.  Hoisted out of the recurrence so the
    # scheduler can overlap slab extraction with the serial gate math, and no
    # wrapper-side transpose / time-major relayout is needed.
    gx0_t = [
        jnp.concatenate(
            [gx0[b * T + t: b * T + t + 1, :] for b in range(B)], axis=0)
        for t in range(T)
    ]                                                             # T x (B, 4H)

    # Full-vreg nonlinearity mask (hoisted): lanes [2H, 3H) are the tanh gate.
    lane = jax.lax.broadcasted_iota(jnp.int32, (B, G), 1)
    is_g = (lane >= 2 * H) & (lane < 3 * H)

    def lstm_cell(gates, h_prev, c_prev, w_hh_l, first_step):
        if not first_step:      # h0 == c0 == 0: skip recurrent matmul at t == 0
            gates = gates + jnp.dot(h_prev, w_hh_l,
                                    preferred_element_type=jnp.float32)
        # One full-vreg sigmoid + one full-vreg tanh instead of four 32-lane
        # partial-vreg EUP ops; slice the gate blocks afterwards.
        act = jnp.where(is_g, jnp.tanh(gates), jax.nn.sigmoid(gates))
        i_g = act[:, 0:H]
        f_g = act[:, H:2 * H]
        g_g = act[:, 2 * H:3 * H]
        o_g = act[:, 3 * H:4 * H]
        c_new = f_g * c_prev + i_g * g_g
        h_new = o_g * jnp.tanh(c_new)
        return h_new, c_new

    zeros = jnp.zeros((B, H), jnp.float32)
    h = [zeros] * num_layers
    c = [zeros] * num_layers

    # Wavefront: at step t, layer l consumes layer l-1's h_t directly, so the
    # serial chain is ~T + L cell updates instead of ~L * T, and no full
    # intermediate sequence is ever materialized.
    for t in range(T):
        h[0], c[0] = lstm_cell(gx0_t[t], h[0], c[0], w_hh[0], t == 0)
        for l in range(1, num_layers):
            g_l = jnp.dot(h[l - 1], w_ih[l],
                          preferred_element_type=jnp.float32) + bias[l]
            h[l], c[l] = lstm_cell(g_l, h[l], c[l], w_hh[l], t == 0)
        # (inter-layer dropout: identity in eval mode)

    # Head on the final hidden state only:
    # dropout(identity) -> fc1 -> dropout(identity) -> fc2, collapsed at init
    # into a single (H, out) matmul + bias (exact; no nonlinearity between).
    out_ref[...] = (jnp.dot(h[num_layers - 1], head_w_ref[...],
                            preferred_element_type=jnp.float32)
                    + head_b_ref[...]).astype(out_ref.dtype)


# ----------------------------------------------------------------------------
# Wrapper
# ----------------------------------------------------------------------------
def _lstm_model_forward_impl(params, x_btf):
    """x_btf: (B, T, input_size) float32 (PyTorch batch_first layout)."""
    B, T, F = x_btf.shape
    num_layers = len(params["lstm"])
    H = params["lstm"][0]["w_hh_t"].shape[0]
    out_size = params["head_w_t"].shape[1]

    # FREE reshape (contiguous view): no wrapper-side transpose kernel.
    x2d = x_btf.reshape(B * T, F)

    inputs = [x2d]
    for lp in params["lstm"]:
        inputs += [lp["w_ih_t"], lp["w_hh_t"], lp["bias"]]
    inputs += [params["head_w_t"], params["head_b"]]

    kernel = functools.partial(_fused_lstm_model_kernel, T, B, H, num_layers)
    return pl.pallas_call(
        kernel,
        out_shape=jax.ShapeDtypeStruct((B, out_size), jnp.float32),
        compiler_params=pltpu.CompilerParams(
            vmem_limit_bytes=32 * 1024 * 1024),
    )(*inputs)


lstm_model_forward = jax.jit(_lstm_model_forward_impl)


# ----------------------------------------------------------------------------
# Parameter init (PyTorch-compatible layout, pre-transposed / pre-fused)
# ----------------------------------------------------------------------------
def init_params(key, input_size, hidden_size, num_layers, output_size):
    params = {"lstm": []}
    k = 1.0 / jnp.sqrt(hidden_size)
    for layer in range(num_layers):
        in_sz = input_size if layer == 0 else hidden_size
        key, k1, k2, k3, k4 = jax.random.split(key, 5)
        w_ih = jax.random.uniform(k1, (4 * hidden_size, in_sz),
                                  minval=-k, maxval=k, dtype=jnp.float32)
        w_hh = jax.random.uniform(k2, (4 * hidden_size, hidden_size),
                                  minval=-k, maxval=k, dtype=jnp.float32)
        b_ih = jax.random.uniform(k3, (4 * hidden_size,),
                                  minval=-k, maxval=k, dtype=jnp.float32)
        b_hh = jax.random.uniform(k4, (4 * hidden_size,),
                                  minval=-k, maxval=k, dtype=jnp.float32)
        params["lstm"].append({
            "w_ih_t": w_ih.T,                       # (in_sz, 4H)
            "w_hh_t": w_hh.T,                       # (H, 4H)
            "bias": (b_ih + b_hh)[None, :],         # (1, 4H)
        })
    key, k1, k2, k3, k4 = jax.random.split(key, 5)
    k_fc1 = 1.0 / jnp.sqrt(hidden_size)
    k_fc2 = 1.0 / jnp.sqrt(25.0)
    params["fc1_w_t"] = jax.random.uniform(k1, (hidden_size, 25),
                                           minval=-k_fc1, maxval=k_fc1,
                                           dtype=jnp.float32)
    params["fc1_b"] = jax.random.uniform(k2, (1, 25),
                                         minval=-k_fc1, maxval=k_fc1,
                                         dtype=jnp.float32)
    params["fc2_w_t"] = jax.random.uniform(k3, (25, output_size),
                                           minval=-k_fc2, maxval=k_fc2,
                                           dtype=jnp.float32)
    params["fc2_b"] = jax.random.uniform(k4, (1, output_size),
                                         minval=-k_fc2, maxval=k_fc2,
                                         dtype=jnp.float32)
    # One-time (init-time) collapse of fc1 -> (identity dropout) -> fc2 into a
    # single affine map; exact because there is no activation between them.
    params["head_w_t"] = params["fc1_w_t"] @ params["fc2_w_t"]          # (H, out)
    params["head_b"] = params["fc1_b"] @ params["fc2_w_t"] + params["fc2_b"]
    return params


# ----------------------------------------------------------------------------
# Pure-JAX reference (faithful layer-by-layer, uncollapsed fc1/fc2)
# ----------------------------------------------------------------------------
def reference_forward(params, x_btf):
    x = jnp.transpose(x_btf, (1, 0, 2))
    T, B, _ = x.shape
    h_seq = x
    for layer_p in params["lstm"]:
        H = layer_p["w_hh_t"].shape[0]
        h = jnp.zeros((B, H), jnp.float32)
        c = jnp.zeros((B, H), jnp.float32)
        outs = []
        for t in range(T):
            g = h_seq[t] @ layer_p["w_ih_t"] + h @ layer_p["w_hh_t"] + layer_p["bias"]
            i = jax.nn.sigmoid(g[:, 0:H])
            f = jax.nn.sigmoid(g[:, H:2 * H])
            gg = jnp.tanh(g[:, 2 * H:3 * H])
            o = jax.nn.sigmoid(g[:, 3 * H:4 * H])
            c = f * c + i * gg
            h = o * jnp.tanh(c)
            outs.append(h)
        h_seq = jnp.stack(outs, axis=0)
    h_last = h_seq[-1]
    z = h_last @ params["fc1_w_t"] + params["fc1_b"]
    return z @ params["fc2_w_t"] + params["fc2_b"]


if __name__ == "__main__":
    B, T, INPUT, HIDDEN, LAYERS, OUT = 2, 8, 4, 32, 2, 1

    key = jax.random.PRNGKey(0)
    key, pkey, xkey = jax.random.split(key, 3)
    params = init_params(pkey, INPUT, HIDDEN, LAYERS, OUT)
    x = jax.random.normal(xkey, (B, T, INPUT), dtype=jnp.float32)

    out = jax.block_until_ready(lstm_model_forward(params, x))

    ref = reference_forward(params, x)
    assert out.shape == (B, OUT)
    assert jnp.allclose(out, ref, atol=1e-4, rtol=1e-4), (out, ref)

    print("KERNEL_OK")
</pallas_src>

<mosaic_0001>
module attributes {stable_mosaic.version = 11 : i64} {
  func.func @_fused_lstm_model_kernel(%arg0: memref<16x4xf32, #tpu.memory_space<vmem>>, %arg1: memref<4x128xf32, #tpu.memory_space<vmem>>, %arg2: memref<32x128xf32, #tpu.memory_space<vmem>>, %arg3: memref<1x128xf32, #tpu.memory_space<vmem>>, %arg4: memref<32x128xf32, #tpu.memory_space<vmem>>, %arg5: memref<32x128xf32, #tpu.memory_space<vmem>>, %arg6: memref<1x128xf32, #tpu.memory_space<vmem>>, %arg7: memref<32x1xf32, #tpu.memory_space<vmem>>, %arg8: memref<1x1xf32, #tpu.memory_space<vmem>>, %arg9: memref<2x1xf32, #tpu.memory_space<vmem>>) attributes {dimension_semantics = [], scalar_prefetch = 0 : i64, scratch_operands = 0 : i64, tpu.core_type = #tpu.core_type<tc>} {
    %c0 = arith.constant 0 : index
    %c0_0 = arith.constant 0 : index
    %0 = vector.load %arg1[%c0, %c0_0] : memref<4x128xf32, #tpu.memory_space<vmem>>, vector<4x128xf32>
    %c0_1 = arith.constant 0 : index
    %c0_2 = arith.constant 0 : index
    %1 = vector.load %arg4[%c0_1, %c0_2] : memref<32x128xf32, #tpu.memory_space<vmem>>, vector<32x128xf32>
    %c0_3 = arith.constant 0 : index
    %c0_4 = arith.constant 0 : index
    %2 = vector.load %arg2[%c0_3, %c0_4] : memref<32x128xf32, #tpu.memory_space<vmem>>, vector<32x128xf32>
    %c0_5 = arith.constant 0 : index
    %c0_6 = arith.constant 0 : index
    %3 = vector.load %arg5[%c0_5, %c0_6] : memref<32x128xf32, #tpu.memory_space<vmem>>, vector<32x128xf32>
    %c0_7 = arith.constant 0 : index
    %c0_8 = arith.constant 0 : index
    %4 = vector.load %arg3[%c0_7, %c0_8] : memref<1x128xf32, #tpu.memory_space<vmem>>, vector<1x128xf32>
    %c0_9 = arith.constant 0 : index
    %c0_10 = arith.constant 0 : index
    %5 = vector.load %arg6[%c0_9, %c0_10] : memref<1x128xf32, #tpu.memory_space<vmem>>, vector<1x128xf32>
    %c0_11 = arith.constant 0 : index
    %c0_12 = arith.constant 0 : index
    %6 = vector.load %arg0[%c0_11, %c0_12] : memref<16x4xf32, #tpu.memory_space<vmem>>, vector<16x4xf32>
    %cst = arith.constant dense<0.000000e+00> : vector<16x128xf32>
    %7 = tpu.matmul %6, %0, %cst {dimension_numbers = #tpu.dot_dimension_numbers<[1], [0], [0], [1], [0, 0, 1, 1], [], []>} : vector<16x4xf32>, vector<4x128xf32>, vector<16x128xf32> -> vector<16x128xf32>
    %8 = vector.broadcast %4 : vector<1x128xf32> to vector<16x128xf32>
    %9 = arith.addf %7, %8 : vector<16x128xf32>
    %10 = vector.extract_strided_slice %9 {offsets = [0, 0], sizes = [1, 128], strides = [1, 1]} : vector<16x128xf32> to vector<1x128xf32>
    %11 = vector.extract_strided_slice %9 {offsets = [8, 0], sizes = [1, 128], strides = [1, 1]} : vector<16x128xf32> to vector<1x128xf32>
    %12 = tpu.concatenate %10, %11 in 0 : vector<1x128xf32>, vector<1x128xf32> -> vector<2x128xf32>
    %13 = vector.extract_strided_slice %9 {offsets = [1, 0], sizes = [1, 128], strides = [1, 1]} : vector<16x128xf32> to vector<1x128xf32>
    %14 = vector.extract_strided_slice %9 {offsets = [9, 0], sizes = [1, 128], strides = [1, 1]} : vector<16x128xf32> to vector<1x128xf32>
    %15 = tpu.concatenate %13, %14 in 0 : vector<1x128xf32>, vector<1x128xf32> -> vector<2x128xf32>
    %16 = vector.extract_strided_slice %9 {offsets = [2, 0], sizes = [1, 128], strides = [1, 1]} : vector<16x128xf32> to vector<1x128xf32>
    %17 = vector.extract_strided_slice %9 {offsets = [10, 0], sizes = [1, 128], strides = [1, 1]} : vector<16x128xf32> to vector<1x128xf32>
    %18 = tpu.concatenate %16, %17 in 0 : vector<1x128xf32>, vector<1x128xf32> -> vector<2x128xf32>
    %19 = vector.extract_strided_slice %9 {offsets = [3, 0], sizes = [1, 128], strides = [1, 1]} : vector<16x128xf32> to vector<1x128xf32>
    %20 = vector.extract_strided_slice %9 {offsets = [11, 0], sizes = [1, 128], strides = [1, 1]} : vector<16x128xf32> to vector<1x128xf32>
    %21 = tpu.concatenate %19, %20 in 0 : vector<1x128xf32>, vector<1x128xf32> -> vector<2x128xf32>
    %22 = vector.extract_strided_slice %9 {offsets = [4, 0], sizes = [1, 128], strides = [1, 1]} : vector<16x128xf32> to vector<1x128xf32>
    %23 = vector.extract_strided_slice %9 {offsets = [12, 0], sizes = [1, 128], strides = [1, 1]} : vector<16x128xf32> to vector<1x128xf32>
    %24 = tpu.concatenate %22, %23 in 0 : vector<1x128xf32>, vector<1x128xf32> -> vector<2x128xf32>
    %25 = vector.extract_strided_slice %9 {offsets = [5, 0], sizes = [1, 128], strides = [1, 1]} : vector<16x128xf32> to vector<1x128xf32>
    %26 = vector.extract_strided_slice %9 {offsets = [13, 0], sizes = [1, 128], strides = [1, 1]} : vector<16x128xf32> to vector<1x128xf32>
    %27 = tpu.concatenate %25, %26 in 0 : vector<1x128xf32>, vector<1x128xf32> -> vector<2x128xf32>
    %28 = vector.extract_strided_slice %9 {offsets = [6, 0], sizes = [1, 128], strides = [1, 1]} : vector<16x128xf32> to vector<1x128xf32>
    %29 = vector.extract_strided_slice %9 {offsets = [14, 0], sizes = [1, 128], strides = [1, 1]} : vector<16x128xf32> to vector<1x128xf32>
    %30 = tpu.concatenate %28, %29 in 0 : vector<1x128xf32>, vector<1x128xf32> -> vector<2x128xf32>
    %31 = vector.extract_strided_slice %9 {offsets = [7, 0], sizes = [1, 128], strides = [1, 1]} : vector<16x128xf32> to vector<1x128xf32>
    %32 = vector.extract_strided_slice %9 {offsets = [15, 0], sizes = [1, 128], strides = [1, 1]} : vector<16x128xf32> to vector<1x128xf32>
    %33 = tpu.concatenate %31, %32 in 0 : vector<1x128xf32>, vector<1x128xf32> -> vector<2x128xf32>
    %34 = tpu.iota {dimensions = array<i32: 1>} : vector<2x128xi32>
    %c64_i32 = arith.constant 64 : i32
    %35 = vector.broadcast %c64_i32 : i32 to vector<2x128xi32>
    %36 = arith.cmpi sge, %34, %35 : vector<2x128xi32>
    %c96_i32 = arith.constant 96 : i32
    %37 = vector.broadcast %c96_i32 : i32 to vector<2x128xi32>
    %38 = arith.cmpi slt, %34, %37 : vector<2x128xi32>
    %39 = arith.andi %36, %38 : vector<2x128xi1>
    %cst_13 = arith.constant 0.000000e+00 : f32
    %40 = vector.broadcast %cst_13 : f32 to vector<2x32xf32>
    %41 = math.tanh %12 : vector<2x128xf32>
    %42 = arith.negf %12 : vector<2x128xf32>
    %43 = math.exp %42 : vector<2x128xf32>
    %cst_14 = arith.constant 1.000000e+00 : f32
    %44 = vector.broadcast %cst_14 : f32 to vector<2x128xf32>
    %45 = arith.addf %44, %43 : vector<2x128xf32>
    %46 = arith.divf %44, %45 : vector<2x128xf32>
    %47 = arith.select %39, %41, %46 : vector<2x128xi1>, vector<2x128xf32>
    %48 = vector.extract_strided_slice %47 {offsets = [0, 0], sizes = [2, 32], strides = [1, 1]} : vector<2x128xf32> to vector<2x32xf32>
    %49 = vector.extract_strided_slice %47 {offsets = [0, 32], sizes = [2, 32], strides = [1, 1]} : vector<2x128xf32> to vector<2x32xf32>
    %50 = vector.extract_strided_slice %47 {offsets = [0, 64], sizes = [2, 32], strides = [1, 1]} : vector<2x128xf32> to vector<2x32xf32>
    %51 = vector.extract_strided_slice %47 {offsets = [0, 96], sizes = [2, 32], strides = [1, 1]} : vector<2x128xf32> to vector<2x32xf32>
    %52 = arith.mulf %49, %40 : vector<2x32xf32>
    %53 = arith.mulf %48, %50 : vector<2x32xf32>
    %54 = arith.addf %52, %53 : vector<2x32xf32>
    %55 = math.tanh %54 : vector<2x32xf32>
    %56 = arith.mulf %51, %55 : vector<2x32xf32>
    %cst_15 = arith.constant dense<0.000000e+00> : vector<2x128xf32>
    %57 = tpu.matmul %56, %1, %cst_15 {dimension_numbers = #tpu.dot_dimension_numbers<[1], [0], [0], [1], [0, 0, 1, 1], [], []>} : vector<2x32xf32>, vector<32x128xf32>, vector<2x128xf32> -> vector<2x128xf32>
    %58 = vector.broadcast %5 : vector<1x128xf32> to vector<2x128xf32>
    %59 = arith.addf %57, %58 : vector<2x128xf32>
    %60 = math.tanh %59 : vector<2x128xf32>
    %61 = arith.negf %59 : vector<2x128xf32>
    %62 = math.exp %61 : vector<2x128xf32>
    %cst_16 = arith.constant 1.000000e+00 : f32
    %63 = vector.broadcast %cst_16 : f32 to vector<2x128xf32>
    %64 = arith.addf %63, %62 : vector<2x128xf32>
    %65 = arith.divf %63, %64 : vector<2x128xf32>
    %66 = arith.select %39, %60, %65 : vector<2x128xi1>, vector<2x128xf32>
    %67 = vector.extract_strided_slice %66 {offsets = [0, 0], sizes = [2, 32], strides = [1, 1]} : vector<2x128xf32> to vector<2x32xf32>
    %68 = vector.extract_strided_slice %66 {offsets = [0, 32], sizes = [2, 32], strides = [1, 1]} : vector<2x128xf32> to vector<2x32xf32>
    %69 = vector.extract_strided_slice %66 {offsets = [0, 64], sizes = [2, 32], strides = [1, 1]} : vector<2x128xf32> to vector<2x32xf32>
    %70 = vector.extract_strided_slice %66 {offsets = [0, 96], sizes = [2, 32], strides = [1, 1]} : vector<2x128xf32> to vector<2x32xf32>
    %71 = arith.mulf %68, %40 : vector<2x32xf32>
    %72 = arith.mulf %67, %69 : vector<2x32xf32>
    %73 = arith.addf %71, %72 : vector<2x32xf32>
    %74 = math.tanh %73 : vector<2x32xf32>
    %75 = arith.mulf %70, %74 : vector<2x32xf32>
    %cst_17 = arith.constant dense<0.000000e+00> : vector<2x128xf32>
    %76 = tpu.matmul %56, %2, %cst_17 {dimension_numbers = #tpu.dot_dimension_numbers<[1], [0], [0], [1], [0, 0, 1, 1], [], []>} : vector<2x32xf32>, vector<32x128xf32>, vector<2x128xf32> -> vector<2x128xf32>
    %77 = arith.addf %15, %76 : vector<2x128xf32>
    %78 = math.tanh %77 : vector<2x128xf32>
    %79 = arith.negf %77 : vector<2x128xf32>
    %80 = math.exp %79 : vector<2x128xf32>
    %cst_18 = arith.constant 1.000000e+00 : f32
    %81 = vector.broadcast %cst_18 : f32 to vector<2x128xf32>
    %82 = arith.addf %81, %80 : vector<2x128xf32>
    %83 = arith.divf %81, %82 : vector<2x128xf32>
    %84 = arith.select %39, %78, %83 : vector<2x128xi1>, vector<2x128xf32>
    %85 = vector.extract_strided_slice %84 {offsets = [0, 0], sizes = [2, 32], strides = [1, 1]} : vector<2x128xf32> to vector<2x32xf32>
    %86 = vector.extract_strided_slice %84 {offsets = [0, 32], sizes = [2, 32], strides = [1, 1]} : vector<2x128xf32> to vector<2x32xf32>
    %87 = vector.extract_strided_slice %84 {offsets = [0, 64], sizes = [2, 32], strides = [1, 1]} : vector<2x128xf32> to vector<2x32xf32>
    %88 = vector.extract_strided_slice %84 {offsets = [0, 96], sizes = [2, 32], strides = [1, 1]} : vector<2x128xf32> to vector<2x32xf32>
    %89 = arith.mulf %86, %54 : vector<2x32xf32>
    %90 = arith.mulf %85, %87 : vector<2x32xf32>
    %91 = arith.addf %89, %90 : vector<2x32xf32>
    %92 = math.tanh %91 : vector<2x32xf32>
    %93 = arith.mulf %88, %92 : vector<2x32xf32>
    %cst_19 = arith.constant dense<0.000000e+00> : vector<2x128xf32>
    %94 = tpu.matmul %93, %1, %cst_19 {dimension_numbers = #tpu.dot_dimension_numbers<[1], [0], [0], [1], [0, 0, 1, 1], [], []>} : vector<2x32xf32>, vector<32x128xf32>, vector<2x128xf32> -> vector<2x128xf32>
    %95 = vector.broadcast %5 : vector<1x128xf32> to vector<2x128xf32>
    %96 = arith.addf %94, %95 : vector<2x128xf32>
    %cst_20 = arith.constant dense<0.000000e+00> : vector<2x128xf32>
    %97 = tpu.matmul %75, %3, %cst_20 {dimension_numbers = #tpu.dot_dimension_numbers<[1], [0], [0], [1], [0, 0, 1, 1], [], []>} : vector<2x32xf32>, vector<32x128xf32>, vector<2x128xf32> -> vector<2x128xf32>
    %98 = arith.addf %96, %97 : vector<2x128xf32>
    %99 = math.tanh %98 : vector<2x128xf32>
    %100 = arith.negf %98 : vector<2x128xf32>
    %101 = math.exp %100 : vector<2x128xf32>
    %cst_21 = arith.constant 1.000000e+00 : f32
    %102 = vector.broadcast %cst_21 : f32 to vector<2x128xf32>
    %103 = arith.addf %102, %101 : vector<2x128xf32>
    %104 = arith.divf %102, %103 : vector<2x128xf32>
    %105 = arith.select %39, %99, %104 : vector<2x128xi1>, vector<2x128xf32>
    %106 = vector.extract_strided_slice %105 {offsets = [0, 0], sizes = [2, 32], strides = [1, 1]} : vector<2x128xf32> to vector<2x32xf32>
    %107 = vector.extract_strided_slice %105 {offsets = [0, 32], sizes = [2, 32], strides = [1, 1]} : vector<2x128xf32> to vector<2x32xf32>
    %108 = vector.extract_strided_slice %105 {offsets = [0, 64], sizes = [2, 32], strides = [1, 1]} : vector<2x128xf32> to vector<2x32xf32>
    %109 = vector.extract_strided_slice %105 {offsets = [0, 96], sizes = [2, 32], strides = [1, 1]} : vector<2x128xf32> to vector<2x32xf32>
    %110 = arith.mulf %107, %73 : vector<2x32xf32>
    %111 = arith.mulf %106, %108 : vector<2x32xf32>
    %112 = arith.addf %110, %111 : vector<2x32xf32>
    %113 = math.tanh %112 : vector<2x32xf32>
    %114 = arith.mulf %109, %113 : vector<2x32xf32>
    %cst_22 = arith.constant dense<0.000000e+00> : vector<2x128xf32>
    %115 = tpu.matmul %93, %2, %cst_22 {dimension_numbers = #tpu.dot_dimension_numbers<[1], [0], [0], [1], [0, 0, 1, 1], [], []>} : vector<2x32xf32>, vector<32x128xf32>, vector<2x128xf32> -> vector<2x128xf32>
    %116 = arith.addf %18, %115 : vector<2x128xf32>
    %117 = math.tanh %116 : vector<2x128xf32>
    %118 = arith.negf %116 : vector<2x128xf32>
    %119 = math.exp %118 : vector<2x128xf32>
    %cst_23 = arith.constant 1.000000e+00 : f32
    %120 = vector.broadcast %cst_23 : f32 to vector<2x128xf32>
    %121 = arith.addf %120, %119 : vector<2x128xf32>
    %122 = arith.divf %120, %121 : vector<2x128xf32>
    %123 = arith.select %39, %117, %122 : vector<2x128xi1>, vector<2x128xf32>
    %124 = vector.extract_strided_slice %123 {offsets = [0, 0], sizes = [2, 32], strides = [1, 1]} : vector<2x128xf32> to vector<2x32xf32>
    %125 = vector.extract_strided_slice %123 {offsets = [0, 32], sizes = [2, 32], strides = [1, 1]} : vector<2x128xf32> to vector<2x32xf32>
    %126 = vector.extract_strided_slice %123 {offsets = [0, 64], sizes = [2, 32], strides = [1, 1]} : vector<2x128xf32> to vector<2x32xf32>
    %127 = vector.extract_strided_slice %123 {offsets = [0, 96], sizes = [2, 32], strides = [1, 1]} : vector<2x128xf32> to vector<2x32xf32>
    %128 = arith.mulf %125, %91 : vector<2x32xf32>
    %129 = arith.mulf %124, %126 : vector<2x32xf32>
    %130 = arith.addf %128, %129 : vector<2x32xf32>
    %131 = math.tanh %130 : vector<2x32xf32>
    %132 = arith.mulf %127, %131 : vector<2x32xf32>
    %cst_24 = arith.constant dense<0.000000e+00> : vector<2x128xf32>
    %133 = tpu.matmul %132, %1, %cst_24 {dimension_numbers = #tpu.dot_dimension_numbers<[1], [0], [0], [1], [0, 0, 1, 1], [], []>} : vector<2x32xf32>, vector<32x128xf32>, vector<2x128xf32> -> vector<2x128xf32>
    %134 = vector.broadcast %5 : vector<1x128xf32> to vector<2x128xf32>
    %135 = arith.addf %133, %134 : vector<2x128xf32>
    %cst_25 = arith.constant dense<0.000000e+00> : vector<2x128xf32>
    %136 = tpu.matmul %114, %3, %cst_25 {dimension_numbers = #tpu.dot_dimension_numbers<[1], [0], [0], [1], [0, 0, 1, 1], [], []>} : vector<2x32xf32>, vector<32x128xf32>, vector<2x128xf32> -> vector<2x128xf32>
    %137 = arith.addf %135, %136 : vector<2x128xf32>
    %138 = math.tanh %137 : vector<2x128xf32>
    %139 = arith.negf %137 : vector<2x128xf32>
    %140 = math.exp %139 : vector<2x128xf32>
    %cst_26 = arith.constant 1.000000e+00 : f32
    %141 = vector.broadcast %cst_26 : f32 to vector<2x128xf32>
    %142 = arith.addf %141, %140 : vector<2x128xf32>
    %143 = arith.divf %141, %142 : vector<2x128xf32>
    %144 = arith.select %39, %138, %143 : vector<2x128xi1>, vector<2x128xf32>
    %145 = vector.extract_strided_slice %144 {offsets = [0, 0], sizes = [2, 32], strides = [1, 1]} : vector<2x128xf32> to vector<2x32xf32>
    %146 = vector.extract_strided_slice %144 {offsets = [0, 32], sizes = [2, 32], strides = [1, 1]} : vector<2x128xf32> to vector<2x32xf32>
    %147 = vector.extract_strided_slice %144 {offsets = [0, 64], sizes = [2, 32], strides = [1, 1]} : vector<2x128xf32> to vector<2x32xf32>
    %148 = vector.extract_strided_slice %144 {offsets = [0, 96], sizes = [2, 32], strides = [1, 1]} : vector<2x128xf32> to vector<2x32xf32>
    %149 = arith.mulf %146, %112 : vector<2x32xf32>
    %150 = arith.mulf %145, %147 : vector<2x32xf32>
    %151 = arith.addf %149, %150 : vector<2x32xf32>
    %152 = math.tanh %151 : vector<2x32xf32>
    %153 = arith.mulf %148, %152 : vector<2x32xf32>
    %cst_27 = arith.constant dense<0.000000e+00> : vector<2x128xf32>
    %154 = tpu.matmul %132, %2, %cst_27 {dimension_numbers = #tpu.dot_dimension_numbers<[1], [0], [0], [1], [0, 0, 1, 1], [], []>} : vector<2x32xf32>, vector<32x128xf32>, vector<2x128xf32> -> vector<2x128xf32>
    %155 = arith.addf %21, %154 : vector<2x128xf32>
    %156 = math.tanh %155 : vector<2x128xf32>
    %157 = arith.negf %155 : vector<2x128xf32>
    %158 = math.exp %157 : vector<2x128xf32>
    %cst_28 = arith.constant 1.000000e+00 : f32
    %159 = vector.broadcast %cst_28 : f32 to vector<2x128xf32>
    %160 = arith.addf %159, %158 : vector<2x128xf32>
    %161 = arith.divf %159, %160 : vector<2x128xf32>
    %162 = arith.select %39, %156, %161 : vector<2x128xi1>, vector<2x128xf32>
    %163 = vector.extract_strided_slice %162 {offsets = [0, 0], sizes = [2, 32], strides = [1, 1]} : vector<2x128xf32> to vector<2x32xf32>
    %164 = vector.extract_strided_slice %162 {offsets = [0, 32], sizes = [2, 32], strides = [1, 1]} : vector<2x128xf32> to vector<2x32xf32>
    %165 = vector.extract_strided_slice %162 {offsets = [0, 64], sizes = [2, 32], strides = [1, 1]} : vector<2x128xf32> to vector<2x32xf32>
    %166 = vector.extract_strided_slice %162 {offsets = [0, 96], sizes = [2, 32], strides = [1, 1]} : vector<2x128xf32> to vector<2x32xf32>
    %167 = arith.mulf %164, %130 : vector<2x32xf32>
    %168 = arith.mulf %163, %165 : vector<2x32xf32>
    %169 = arith.addf %167, %168 : vector<2x32xf32>
    %170 = math.tanh %169 : vector<2x32xf32>
    %171 = arith.mulf %166, %170 : vector<2x32xf32>
    %cst_29 = arith.constant dense<0.000000e+00> : vector<2x128xf32>
    %172 = tpu.matmul %171, %1, %cst_29 {dimension_numbers = #tpu.dot_dimension_numbers<[1], [0], [0], [1], [0, 0, 1, 1], [], []>} : vector<2x32xf32>, vector<32x128xf32>, vector<2x128xf32> -> vector<2x128xf32>
    %173 = vector.broadcast %5 : vector<1x128xf32> to vector<2x128xf32>
    %174 = arith.addf %172, %173 : vector<2x128xf32>
    %cst_30 = arith.constant dense<0.000000e+00> : vector<2x128xf32>
    %175 = tpu.matmul %153, %3, %cst_30 {dimension_numbers = #tpu.dot_dimension_numbers<[1], [0], [0], [1], [0, 0, 1, 1], [], []>} : vector<2x32xf32>, vector<32x128xf32>, vector<2x128xf32> -> vector<2x128xf32>
    %176 = arith.addf %174, %175 : vector<2x128xf32>
    %177 = math.tanh %176 : vector<2x128xf32>
    %178 = arith.negf %176 : vector<2x128xf32>
    %179 = math.exp %178 : vector<2x128xf32>
    %cst_31 = arith.constant 1.000000e+00 : f32
    %180 = vector.broadcast %cst_31 : f32 to vector<2x128xf32>
    %181 = arith.addf %180, %179 : vector<2x128xf32>
    %182 = arith.divf %180, %181 : vector<2x128xf32>
    %183 = arith.select %39, %177, %182 : vector<2x128xi1>, vector<2x128xf32>
    %184 = vector.extract_strided_slice %183 {offsets = [0, 0], sizes = [2, 32], strides = [1, 1]} : vector<2x128xf32> to vector<2x32xf32>
    %185 = vector.extract_strided_slice %183 {offsets = [0, 32], sizes = [2, 32], strides = [1, 1]} : vector<2x128xf32> to vector<2x32xf32>
    %186 = vector.extract_strided_slice %183 {offsets = [0, 64], sizes = [2, 32], strides = [1, 1]} : vector<2x128xf32> to vector<2x32xf32>
    %187 = vector.extract_strided_slice %183 {offsets = [0, 96], sizes = [2, 32], strides = [1, 1]} : vector<2x128xf32> to vector<2x32xf32>
    %188 = arith.mulf %185, %151 : vector<2x32xf32>
    %189 = arith.mulf %184, %186 : vector<2x32xf32>
    %190 = arith.addf %188, %189 : vector<2x32xf32>
    %191 = math.tanh %190 : vector<2x32xf32>
    %192 = arith.mulf %187, %191 : vector<2x32xf32>
    %cst_32 = arith.constant dense<0.000000e+00> : vector<2x128xf32>
    %193 = tpu.matmul %171, %2, %cst_32 {dimension_numbers = #tpu.dot_dimension_numbers<[1], [0], [0], [1], [0, 0, 1, 1], [], []>} : vector<2x32xf32>, vector<32x128xf32>, vector<2x128xf32> -> vector<2x128xf32>
    %194 = arith.addf %24, %193 : vector<2x128xf32>
    %195 = math.tanh %194 : vector<2x128xf32>
    %196 = arith.negf %194 : vector<2x128xf32>
    %197 = math.exp %196 : vector<2x128xf32>
    %cst_33 = arith.constant 1.000000e+00 : f32
    %198 = vector.broadcast %cst_33 : f32 to vector<2x128xf32>
    %199 = arith.addf %198, %197 : vector<2x128xf32>
    %200 = arith.divf %198, %199 : vector<2x128xf32>
    %201 = arith.select %39, %195, %200 : vector<2x128xi1>, vector<2x128xf32>
    %202 = vector.extract_strided_slice %201 {offsets = [0, 0], sizes = [2, 32], strides = [1, 1]} : vector<2x128xf32> to vector<2x32xf32>
    %203 = vector.extract_strided_slice %201 {offsets = [0, 32], sizes = [2, 32], strides = [1, 1]} : vector<2x128xf32> to vector<2x32xf32>
    %204 = vector.extract_strided_slice %201 {offsets = [0, 64], sizes = [2, 32], strides = [1, 1]} : vector<2x128xf32> to vector<2x32xf32>
    %205 = vector.extract_strided_slice %201 {offsets = [0, 96], sizes = [2, 32], strides = [1, 1]} : vector<2x128xf32> to vector<2x32xf32>
    %206 = arith.mulf %203, %169 : vector<2x32xf32>
    %207 = arith.mulf %202, %204 : vector<2x32xf32>
    %208 = arith.addf %206, %207 : vector<2x32xf32>
    %209 = math.tanh %208 : vector<2x32xf32>
    %210 = arith.mulf %205, %209 : vector<2x32xf32>
    %cst_34 = arith.constant dense<0.000000e+00> : vector<2x128xf32>
    %211 = tpu.matmul %210, %1, %cst_34 {dimension_numbers = #tpu.dot_dimension_numbers<[1], [0], [0], [1], [0, 0, 1, 1], [], []>} : vector<2x32xf32>, vector<32x128xf32>, vector<2x128xf32> -> vector<2x128xf32>
    %212 = vector.broadcast %5 : vector<1x128xf32> to vector<2x128xf32>
    %213 = arith.addf %211, %212 : vector<2x128xf32>
    %cst_35 = arith.constant dense<0.000000e+00> : vector<2x128xf32>
    %214 = tpu.matmul %192, %3, %cst_35 {dimension_numbers = #tpu.dot_dimension_numbers<[1], [0], [0], [1], [0, 0, 1, 1], [], []>} : vector<2x32xf32>, vector<32x128xf32>, vector<2x128xf32> -> vector<2x128xf32>
    %215 = arith.addf %213, %214 : vector<2x128xf32>
    %216 = math.tanh %215 : vector<2x128xf32>
    %217 = arith.negf %215 : vector<2x128xf32>
    %218 = math.exp %217 : vector<2x128xf32>
    %cst_36 = arith.constant 1.000000e+00 : f32
    %219 = vector.broadcast %cst_36 : f32 to vector<2x128xf32>
    %220 = arith.addf %219, %218 : vector<2x128xf32>
    %221 = arith.divf %219, %220 : vector<2x128xf32>
    %222 = arith.select %39, %216, %221 : vector<2x128xi1>, vector<2x128xf32>
    %223 = vector.extract_strided_slice %222 {offsets = [0, 0], sizes = [2, 32], strides = [1, 1]} : vector<2x128xf32> to vector<2x32xf32>
    %224 = vector.extract_strided_slice %222 {offsets = [0, 32], sizes = [2, 32], strides = [1, 1]} : vector<2x128xf32> to vector<2x32xf32>
    %225 = vector.extract_strided_slice %222 {offsets = [0, 64], sizes = [2, 32], strides = [1, 1]} : vector<2x128xf32> to vector<2x32xf32>
    %226 = vector.extract_strided_slice %222 {offsets = [0, 96], sizes = [2, 32], strides = [1, 1]} : vector<2x128xf32> to vector<2x32xf32>
    %227 = arith.mulf %224, %190 : vector<2x32xf32>
    %228 = arith.mulf %223, %225 : vector<2x32xf32>
    %229 = arith.addf %227, %228 : vector<2x32xf32>
    %230 = math.tanh %229 : vector<2x32xf32>
    %231 = arith.mulf %226, %230 : vector<2x32xf32>
    %cst_37 = arith.constant dense<0.000000e+00> : vector<2x128xf32>
    %232 = tpu.matmul %210, %2, %cst_37 {dimension_numbers = #tpu.dot_dimension_numbers<[1], [0], [0], [1], [0, 0, 1, 1], [], []>} : vector<2x32xf32>, vector<32x128xf32>, vector<2x128xf32> -> vector<2x128xf32>
    %233 = arith.addf %27, %232 : vector<2x128xf32>
    %234 = math.tanh %233 : vector<2x128xf32>
    %235 = arith.negf %233 : vector<2x128xf32>
    %236 = math.exp %235 : vector<2x128xf32>
    %cst_38 = arith.constant 1.000000e+00 : f32
    %237 = vector.broadcast %cst_38 : f32 to vector<2x128xf32>
    %238 = arith.addf %237, %236 : vector<2x128xf32>
    %239 = arith.divf %237, %238 : vector<2x128xf32>
    %240 = arith.select %39, %234, %239 : vector<2x128xi1>, vector<2x128xf32>
    %241 = vector.extract_strided_slice %240 {offsets = [0, 0], sizes = [2, 32], strides = [1, 1]} : vector<2x128xf32> to vector<2x32xf32>
    %242 = vector.extract_strided_slice %240 {offsets = [0, 32], sizes = [2, 32], strides = [1, 1]} : vector<2x128xf32> to vector<2x32xf32>
    %243 = vector.extract_strided_slice %240 {offsets = [0, 64], sizes = [2, 32], strides = [1, 1]} : vector<2x128xf32> to vector<2x32xf32>
    %244 = vector.extract_strided_slice %240 {offsets = [0, 96], sizes = [2, 32], strides = [1, 1]} : vector<2x128xf32> to vector<2x32xf32>
    %245 = arith.mulf %242, %208 : vector<2x32xf32>
    %246 = arith.mulf %241, %243 : vector<2x32xf32>
    %247 = arith.addf %245, %246 : vector<2x32xf32>
    %248 = math.tanh %247 : vector<2x32xf32>
    %249 = arith.mulf %244, %248 : vector<2x32xf32>
    %cst_39 = arith.constant dense<0.000000e+00> : vector<2x128xf32>
    %250 = tpu.matmul %249, %1, %cst_39 {dimension_numbers = #tpu.dot_dimension_numbers<[1], [0], [0], [1], [0, 0, 1, 1], [], []>} : vector<2x32xf32>, vector<32x128xf32>, vector<2x128xf32> -> vector<2x128xf32>
    %251 = vector.broadcast %5 : vector<1x128xf32> to vector<2x128xf32>
    %252 = arith.addf %250, %251 : vector<2x128xf32>
    %cst_40 = arith.constant dense<0.000000e+00> : vector<2x128xf32>
    %253 = tpu.matmul %231, %3, %cst_40 {dimension_numbers = #tpu.dot_dimension_numbers<[1], [0], [0], [1], [0, 0, 1, 1], [], []>} : vector<2x32xf32>, vector<32x128xf32>, vector<2x128xf32> -> vector<2x128xf32>
    %254 = arith.addf %252, %253 : vector<2x128xf32>
    %255 = math.tanh %254 : vector<2x128xf32>
    %256 = arith.negf %254 : vector<2x128xf32>
    %257 = math.exp %256 : vector<2x128xf32>
    %cst_41 = arith.constant 1.000000e+00 : f32
    %258 = vector.broadcast %cst_41 : f32 to vector<2x128xf32>
    %259 = arith.addf %258, %257 : vector<2x128xf32>
    %260 = arith.divf %258, %259 : vector<2x128xf32>
    %261 = arith.select %39, %255, %260 : vector<2x128xi1>, vector<2x128xf32>
    %262 = vector.extract_strided_slice %261 {offsets = [0, 0], sizes = [2, 32], strides = [1, 1]} : vector<2x128xf32> to vector<2x32xf32>
    %263 = vector.extract_strided_slice %261 {offsets = [0, 32], sizes = [2, 32], strides = [1, 1]} : vector<2x128xf32> to vector<2x32xf32>
    %264 = vector.extract_strided_slice %261 {offsets = [0, 64], sizes = [2, 32], strides = [1, 1]} : vector<2x128xf32> to vector<2x32xf32>
    %265 = vector.extract_strided_slice %261 {offsets = [0, 96], sizes = [2, 32], strides = [1, 1]} : vector<2x128xf32> to vector<2x32xf32>
    %266 = arith.mulf %263, %229 : vector<2x32xf32>
    %267 = arith.mulf %262, %264 : vector<2x32xf32>
    %268 = arith.addf %266, %267 : vector<2x32xf32>
    %269 = math.tanh %268 : vector<2x32xf32>
    %270 = arith.mulf %265, %269 : vector<2x32xf32>
    %cst_42 = arith.constant dense<0.000000e+00> : vector<2x128xf32>
    %271 = tpu.matmul %249, %2, %cst_42 {dimension_numbers = #tpu.dot_dimension_numbers<[1], [0], [0], [1], [0, 0, 1, 1], [], []>} : vector<2x32xf32>, vector<32x128xf32>, vector<2x128xf32> -> vector<2x128xf32>
    %272 = arith.addf %30, %271 : vector<2x128xf32>
    %273 = math.tanh %272 : vector<2x128xf32>
    %274 = arith.negf %272 : vector<2x128xf32>
    %275 = math.exp %274 : vector<2x128xf32>
    %cst_43 = arith.constant 1.000000e+00 : f32
    %276 = vector.broadcast %cst_43 : f32 to vector<2x128xf32>
    %277 = arith.addf %276, %275 : vector<2x128xf32>
    %278 = arith.divf %276, %277 : vector<2x128xf32>
    %279 = arith.select %39, %273, %278 : vector<2x128xi1>, vector<2x128xf32>
    %280 = vector.extract_strided_slice %279 {offsets = [0, 0], sizes = [2, 32], strides = [1, 1]} : vector<2x128xf32> to vector<2x32xf32>
    %281 = vector.extract_strided_slice %279 {offsets = [0, 32], sizes = [2, 32], strides = [1, 1]} : vector<2x128xf32> to vector<2x32xf32>
    %282 = vector.extract_strided_slice %279 {offsets = [0, 64], sizes = [2, 32], strides = [1, 1]} : vector<2x128xf32> to vector<2x32xf32>
    %283 = vector.extract_strided_slice %279 {offsets = [0, 96], sizes = [2, 32], strides = [1, 1]} : vector<2x128xf32> to vector<2x32xf32>
    %284 = arith.mulf %281, %247 : vector<2x32xf32>
    %285 = arith.mulf %280, %282 : vector<2x32xf32>
    %286 = arith.addf %284, %285 : vector<2x32xf32>
    %287 = math.tanh %286 : vector<2x32xf32>
    %288 = arith.mulf %283, %287 : vector<2x32xf32>
    %cst_44 = arith.constant dense<0.000000e+00> : vector<2x128xf32>
    %289 = tpu.matmul %288, %1, %cst_44 {dimension_numbers = #tpu.dot_dimension_numbers<[1], [0], [0], [1], [0, 0, 1, 1], [], []>} : vector<2x32xf32>, vector<32x128xf32>, vector<2x128xf32> -> vector<2x128xf32>
    %290 = vector.broadcast %5 : vector<1x128xf32> to vector<2x128xf32>
    %291 = arith.addf %289, %290 : vector<2x128xf32>
    %cst_45 = arith.constant dense<0.000000e+00> : vector<2x128xf32>
    %292 = tpu.matmul %270, %3, %cst_45 {dimension_numbers = #tpu.dot_dimension_numbers<[1], [0], [0], [1], [0, 0, 1, 1], [], []>} : vector<2x32xf32>, vector<32x128xf32>, vector<2x128xf32> -> vector<2x128xf32>
    %293 = arith.addf %291, %292 : vector<2x128xf32>
    %294 = math.tanh %293 : vector<2x128xf32>
    %295 = arith.negf %293 : vector<2x128xf32>
    %296 = math.exp %295 : vector<2x128xf32>
    %cst_46 = arith.constant 1.000000e+00 : f32
    %297 = vector.broadcast %cst_46 : f32 to vector<2x128xf32>
    %298 = arith.addf %297, %296 : vector<2x128xf32>
    %299 = arith.divf %297, %298 : vector<2x128xf32>
    %300 = arith.select %39, %294, %299 : vector<2x128xi1>, vector<2x128xf32>
    %301 = vector.extract_strided_slice %300 {offsets = [0, 0], sizes = [2, 32], strides = [1, 1]} : vector<2x128xf32> to vector<2x32xf32>
    %302 = vector.extract_strided_slice %300 {offsets = [0, 32], sizes = [2, 32], strides = [1, 1]} : vector<2x128xf32> to vector<2x32xf32>
    %303 = vector.extract_strided_slice %300 {offsets = [0, 64], sizes = [2, 32], strides = [1, 1]} : vector<2x128xf32> to vector<2x32xf32>
    %304 = vector.extract_strided_slice %300 {offsets = [0, 96], sizes = [2, 32], strides = [1, 1]} : vector<2x128xf32> to vector<2x32xf32>
    %305 = arith.mulf %302, %268 : vector<2x32xf32>
    %306 = arith.mulf %301, %303 : vector<2x32xf32>
    %307 = arith.addf %305, %306 : vector<2x32xf32>
    %308 = math.tanh %307 : vector<2x32xf32>
    %309 = arith.mulf %304, %308 : vector<2x32xf32>
    %cst_47 = arith.constant dense<0.000000e+00> : vector<2x128xf32>
    %310 = tpu.matmul %288, %2, %cst_47 {dimension_numbers = #tpu.dot_dimension_numbers<[1], [0], [0], [1], [0, 0, 1, 1], [], []>} : vector<2x32xf32>, vector<32x128xf32>, vector<2x128xf32> -> vector<2x128xf32>
    %311 = arith.addf %33, %310 : vector<2x128xf32>
    %312 = math.tanh %311 : vector<2x128xf32>
    %313 = arith.negf %311 : vector<2x128xf32>
    %314 = math.exp %313 : vector<2x128xf32>
    %cst_48 = arith.constant 1.000000e+00 : f32
    %315 = vector.broadcast %cst_48 : f32 to vector<2x128xf32>
    %316 = arith.addf %315, %314 : vector<2x128xf32>
    %317 = arith.divf %315, %316 : vector<2x128xf32>
    %318 = arith.select %39, %312, %317 : vector<2x128xi1>, vector<2x128xf32>
    %319 = vector.extract_strided_slice %318 {offsets = [0, 0], sizes = [2, 32], strides = [1, 1]} : vector<2x128xf32> to vector<2x32xf32>
    %320 = vector.extract_strided_slice %318 {offsets = [0, 32], sizes = [2, 32], strides = [1, 1]} : vector<2x128xf32> to vector<2x32xf32>
    %321 = vector.extract_strided_slice %318 {offsets = [0, 64], sizes = [2, 32], strides = [1, 1]} : vector<2x128xf32> to vector<2x32xf32>
    %322 = vector.extract_strided_slice %318 {offsets = [0, 96], sizes = [2, 32], strides = [1, 1]} : vector<2x128xf32> to vector<2x32xf32>
    %323 = arith.mulf %320, %286 : vector<2x32xf32>
    %324 = arith.mulf %319, %321 : vector<2x32xf32>
    %325 = arith.addf %323, %324 : vector<2x32xf32>
    %326 = math.tanh %325 : vector<2x32xf32>
    %327 = arith.mulf %322, %326 : vector<2x32xf32>
    %cst_49 = arith.constant dense<0.000000e+00> : vector<2x128xf32>
    %328 = tpu.matmul %327, %1, %cst_49 {dimension_numbers = #tpu.dot_dimension_numbers<[1], [0], [0], [1], [0, 0, 1, 1], [], []>} : vector<2x32xf32>, vector<32x128xf32>, vector<2x128xf32> -> vector<2x128xf32>
    %329 = vector.broadcast %5 : vector<1x128xf32> to vector<2x128xf32>
    %330 = arith.addf %328, %329 : vector<2x128xf32>
    %cst_50 = arith.constant dense<0.000000e+00> : vector<2x128xf32>
    %331 = tpu.matmul %309, %3, %cst_50 {dimension_numbers = #tpu.dot_dimension_numbers<[1], [0], [0], [1], [0, 0, 1, 1], [], []>} : vector<2x32xf32>, vector<32x128xf32>, vector<2x128xf32> -> vector<2x128xf32>
    %332 = arith.addf %330, %331 : vector<2x128xf32>
    %333 = math.tanh %332 : vector<2x128xf32>
    %334 = arith.negf %332 : vector<2x128xf32>
    %335 = math.exp %334 : vector<2x128xf32>
    %cst_51 = arith.constant 1.000000e+00 : f32
    %336 = vector.broadcast %cst_51 : f32 to vector<2x128xf32>
    %337 = arith.addf %336, %335 : vector<2x128xf32>
    %338 = arith.divf %336, %337 : vector<2x128xf32>
    %339 = arith.select %39, %333, %338 : vector<2x128xi1>, vector<2x128xf32>
    %340 = vector.extract_strided_slice %339 {offsets = [0, 0], sizes = [2, 32], strides = [1, 1]} : vector<2x128xf32> to vector<2x32xf32>
    %341 = vector.extract_strided_slice %339 {offsets = [0, 32], sizes = [2, 32], strides = [1, 1]} : vector<2x128xf32> to vector<2x32xf32>
    %342 = vector.extract_strided_slice %339 {offsets = [0, 64], sizes = [2, 32], strides = [1, 1]} : vector<2x128xf32> to vector<2x32xf32>
    %343 = vector.extract_strided_slice %339 {offsets = [0, 96], sizes = [2, 32], strides = [1, 1]} : vector<2x128xf32> to vector<2x32xf32>
    %344 = arith.mulf %341, %307 : vector<2x32xf32>
    %345 = arith.mulf %340, %342 : vector<2x32xf32>
    %346 = arith.addf %344, %345 : vector<2x32xf32>
    %347 = math.tanh %346 : vector<2x32xf32>
    %348 = arith.mulf %343, %347 : vector<2x32xf32>
    %c0_52 = arith.constant 0 : index
    %c0_53 = arith.constant 0 : index
    %349 = vector.load %arg7[%c0_52, %c0_53] : memref<32x1xf32, #tpu.memory_space<vmem>>, vector<32x1xf32>
    %cst_54 = arith.constant dense<0.000000e+00> : vector<2x1xf32>
    %350 = tpu.matmul %348, %349, %cst_54 {dimension_numbers = #tpu.dot_dimension_numbers<[1], [0], [0], [1], [0, 0, 1, 1], [], []>} : vector<2x32xf32>, vector<32x1xf32>, vector<2x1xf32> -> vector<2x1xf32>
    %c0_55 = arith.constant 0 : index
    %c0_56 = arith.constant 0 : index
    %351 = vector.load %arg8[%c0_55, %c0_56] : memref<1x1xf32, #tpu.memory_space<vmem>>, vector<1x1xf32>
    %352 = vector.broadcast %351 : vector<1x1xf32> to vector<2x1xf32>
    %353 = arith.addf %350, %352 : vector<2x1xf32>
    %c0_57 = arith.constant 0 : index
    %c0_58 = arith.constant 0 : index
    %354 = vector.load %arg9[%c0_57, %c0_58] : memref<2x1xf32, #tpu.memory_space<vmem>>, vector<2x1xf32>
    tpu.vector_store %arg9[%c0_57, %c0_58], %353 {strides = array<i32>} : memref<2x1xf32, #tpu.memory_space<vmem>>, vector<2x1xf32>,
    return
  }
}

</mosaic_0001>

<bundles_post_ra>
// kernel: _lstm_model_forward_impl.1
= control target key start
LH: loop header
LB: loop body
LE: loop exit
PB: predicated region body
PF: predicated region fallthrough
CT: control target
= control target key end

     0   :  { %s3585_s0 = inlined_call_operand.vmem [shape: f32[16,4], index: 0, kind: input, shape index: {}]   ;;  %s3586_s1 = inlined_call_operand.hbm [shape: f32[4,128], index: 1, kind: input, shape index: {}]   ;;  %s3587_s2 = inlined_call_operand.vmem [shape: f32[32,128], index: 2, kind: input, shape index: {}]   ;;  %s3588_s3 = inlined_call_operand.hbm [shape: f32[1,128], index: 3, kind: input, shape index: {}]   ;;  %s3589_s4 = inlined_call_operand.vmem [shape: f32[32,128], index: 4, kind: input, shape index: {}]   ;;  %s3590_s5 = inlined_call_operand.hbm [shape: f32[32,128], index: 5, kind: input, shape index: {}]   ;;  %s3591_s6 = inlined_call_operand.vmem [shape: f32[1,128], index: 6, kind: input, shape index: {}]   ;;  %s3592_s7 = inlined_call_operand.vmem [shape: f32[32,1], index: 7, kind: input, shape index: {}]   ;;  %s3593_s8 = inlined_call_operand.<no memory space> [shape: f32[1,1], index: 8, kind: input, shape index: {}]   ;;  %s3594_s9 = inlined_call_operand.vmem [shape: f32[2,1], index: 9, kind: output, shape index: {}]  }
   0x1   :  { %v14_v0 = vstv %s3593_s8 }
   0x2   :  { %15 = vst [vmem:[#allocation2] sm:$0x1] %v14_v0 }
   0x3   :  { %16 = vsyncpa [#allocation4], 0 }
   0x4   :  { %17 = vsyncpa [#allocation6], 0  ;;  %s2985_s11 = smov [#allocation5]   ;;  %s2986_s13 = smov [#allocation3]  }
   0x5   :  { %s38_s12 = sshll.u32 %s2985_s11, 4  ;;  %s26_s14 = sshll.u32 %s2986_s13, 4  ;;  %s39_s12 = int_to_ptr.vmem [resolvable:$true] %s38_s12  ;;  %s27_s14 = int_to_ptr.vmem [resolvable:$true] %s26_s14 }
   0x6   :  { %s2929_s15 = scalar_lea.vmem %s39_s12, 16  ;;  %s2933_s16 = scalar_lea.vmem %s39_s12, 32 }
   0x7   :  { %p2930_p0 = scmp.ne.s32.totalorder %s39_s12, %s2929_s15  ;;  %p2934_p1 = scmp.lt.s32.totalorder %s39_s12, %s39_s12 }
   0x8   :  { %p2935_p2 = scmp.lt.s32.totalorder %s2933_s16, %s2929_s15 }
   0xa   :  { %p2936_p3 = por %p2935_p2, %p2934_p1 }
   0xc   :  { %p2937_p4 = pnand %p2936_p3, %p2930_p0 }
   0xe   :  { %2940 = shalt.err (!%p2937_p4)
}
   0xf   :  { %41 = dma.hbm_to_vmem [thread:$0]  %s3588_s3, 16, %s39_s12, [#allocation6]  }
  0x10   :  { %s2949_s8 = scalar_lea.vmem %s27_s14, 64  ;;  %p2954_p6 = scmp.lt.s32.totalorder %s27_s14, %s27_s14 }
  0x11   :  { %p2950_p5 = scmp.ne.s32.totalorder %s27_s14, %s2949_s8  ;;  %p2955_p7 = scmp.lt.s32.totalorder %s2949_s8, %s2949_s8 }
  0x13   :  { %p2956_p8 = por %p2955_p7, %p2954_p6 }
  0x15   :  { %p2957_p9 = pnand %p2956_p8, %p2950_p5 }
  0x17   :  { %2960 = shalt.err (!%p2957_p9)
}
  0x18   :  { %29 = dma.hbm_to_vmem [thread:$0]  %s3586_s1, 64, %s27_s14, [#allocation4]  }
  0x19   :  { %s2987_s21 = smov [#allocation7]  }
  0x1a   :  { %s49_s22 = sshll.u32 %s2987_s21, 4  ;;  %s50_s22 = int_to_ptr.vmem [resolvable:$true] %s49_s22 }
  0x1b   :  { %s2969_s23 = scalar_lea.vmem %s50_s22, 512  ;;  %p2974_p11 = scmp.lt.s32.totalorder %s50_s22, %s50_s22 }
  0x1c   :  { %p2970_p10 = scmp.ne.s32.totalorder %s50_s22, %s2969_s23  ;;  %p2975_p12 = scmp.lt.s32.totalorder %s2969_s23, %s2969_s23 }
  0x1e   :  { %p2976_p13 = por %p2975_p12, %p2974_p11 }
  0x20   :  { %p2977_p0 = pnand %p2976_p13, %p2970_p10 }
  0x22   :  { %2980 = shalt.err (!%p2977_p0)
}
  0x23   :  { %s2988_s3 = smov 128   ;;  %s2989_s24 = smov 8  }
  0x24   :  { %55 = dma.hbm_to_vmem [thread:$0]  %s3590_s5, 512, %s50_s22, [#allocation6], %s2988_s3, %s2988_s3, %s2989_s24  }
  0x25   :  { %2981 = dma.done.wait [#allocation4], 64  }
  0x26   :  { %2982 = vsyncadd [#allocation4], 4294967232 }
  0x27   :  { %2983 = dma.done.wait [#allocation6], 528  }
  0x28   :  { %2984 = vsyncadd [#allocation6], 4294966768  ;;  %vm101_vm0 = vcmask 1043456   ;;  %vm94_vm1 = vcmask 31744   ;;  %v71_v1 = vld [vmem:[#allocation3] sm:$0xf]  ;;  %v219_v34 = vlaneseq }
  0x29   :  { %v86_v2 = vld [vmem:[%s3585_s0] sm:$0xff]  ;;  %v87_v3 = vld [vmem:[%s3585_s0 + $0x8] sm:$0xff]  ;;  %2517 = vmatprep.subr.msk.mxu0 %vm101_vm0, %v71_v1  ;;  %vm183_vm2 = vcmask 1040384   ;;  %s2990_s0 = smov 64   ;;  %s2991_s5 = smov 32   ;;  %v3098_v45 = vld [vmem:[%s3589_s4 + $0x18] sm:$0xff] }
  0x2a   :  { %2519 = vmatprep.mubr.msk.f32.mxu0 %vm94_vm1, %v86_v2  ;;  %2518 = vmatpush3.msk.msra.mxu0 %vm101_vm0, %v71_v1  ;;  %v2354_v4 = vld [vmem:[#allocation5] ss:$0 sm:$0xff]  ;;  %v220_v35 = vand.u32 127, %v219_v34  ;;  %v3103_v46 = vld [vmem:[%s3587_s2 + $0x18] sm:$0xff]  ;;  %v2992_v47 = vmov 0.0   ;;  %v3110_v48 = vld [vmem:[%s3589_s4 + $0x10] sm:$0xff] }
  0x2b   :  { %2520 = vmatmul.mubr.msk.f32.vlgmr.msra.gmra.mxu0 %vm94_vm1, %v87_v3  ;;  %2522 = vmatprep.subr.mxu1 %v2992_v47  ;;  %v3115_v49 = vld [vmem:[%s3587_s2 + $0x10] sm:$0xff]  ;;  %v3124_v50 = vld [vmem:[%s3589_s4 + $0x8] sm:$0xff]  ;;  %v3138_v52 = vld [vmem:[%s3589_s4] sm:$0xff]  ;;  %vm2993_vm6 = vmmov 0   ;;  %vm258_vm7 = vcmask 261120   ;;  %vm2346_vm8 = vcmask 1024  }
  0x2c   :  { %vm221_vm3 = vcmp.ge.s32.totalorder %v220_v35, 64  ;;  %vm222_vm4 = vcmp.lt.s32.totalorder %v220_v35, 96  ;;  %2533 = vmatprep.subr.mxu0 %v2992_v47  ;;  %2523 = vmatpush3.msra.mxu1 %v3098_v45  ;;  %v3129_v51 = vld [vmem:[%s3587_s2 + $0x8] sm:$0xff]  ;;  %v3145_v53 = vld [vmem:[%s3587_s2] sm:$0xff] }
  0x2d   :  { %vm3084_vm5 = vmand %vm221_vm3, %vm222_vm4  ;;  %2534 = vmatpush3.msra.mxu0 %v3103_v46  ;;  %2524 = vmatprep.subr.mxu1 %v2992_v47  ;;  %v3176_v58 = vld [vmem:[%s3591_s6] ss:$0 sm:$0xff]  ;;  %v2261_v36 = vld [vmem:[%s3592_s7 + $0x8] sm:$0xff] }
  0x2e   :  { %2535 = vmatprep.subr.mxu0 %v2992_v47  ;;  %2525 = vmatpush3.msra.mxu1 %v3110_v48 }
  0x2f   :  { %2536 = vmatpush3.msra.mxu0 %v3115_v49  ;;  %2526 = vmatprep.subr.mxu1 %v2992_v47 }
  0x30   :  { %2537 = vmatprep.subr.mxu0 %v2992_v47  ;;  %2527 = vmatpush3.msra.mxu1 %v3124_v50 }
  0x31   :  { %2538 = vmatpush3.msra.mxu0 %v3129_v51  ;;  %2528 = vmatprep.subr.mxu1 %v2992_v47 }
  0x32   :  { %2539 = vmatprep.subr.mxu0 %v2992_v47  ;;  %2529 = vmatpush3.msra.mxu1 %v3138_v52 }
  0x33   :  { %2530 = vmatprep.mubr.msk.f32.mxu1 %vm2993_vm6, %v2992_v47  ;;  %2540 = vmatpush3.msra.mxu0 %v3145_v53 }
  0x34   :  { %2541 = vmatprep.mubr.msk.f32.mxu0 %vm2993_vm6, %v2992_v47  ;;  %2544 = vmatprep.subr.mxu1 %v2992_v47 }
  0x35   :  { %2555 = vmatprep.subr.mxu0 %v2992_v47 }
  0xeb   :  { %v2521_v5 = vpop.f32.mrf.mxu0 }
  0xec   :  { %v177_v6 = vadd.f32 %v2521_v5, %v2354_v4 }
  0xed   :  { %v171_v7 = vpop.f32.mrf.mxu0 }
  0xee   :  { %v181_v8 = vrot.slane %v177_v6, 7  ;;  %v172_v9 = vadd.f32 %v2354_v4, %v171_v7  ;;  %v191_v10 = vrot.slane %v177_v6, 1  ;;  %v196_v11 = vrot.slane %v177_v6, 2 }
  0xef   :  { %v201_v12 = vrot.slane %v177_v6, 3  ;;  %v206_v13 = vrot.slane %v177_v6, 4  ;;  %v211_v14 = vrot.slane %v177_v6, 5  ;;  %v216_v22 = vrot.slane %v177_v6, 6 }
  0xf0   :  { %v184_v15 = vsel %vm183_vm2, %v172_v9, %v181_v8  ;;  %v186_v16 = vrot.slane %v172_v9, 1  ;;  %v189_v17 = vrot.slane %v172_v9, 2  ;;  %v194_v18 = vrot.slane %v172_v9, 3 }
  0xf1   :  { %v2358_v19 = vmul.f32 -1.442695, %v184_v15  ;;  %v199_v20 = vrot.slane %v172_v9, 4  ;;  %v204_v21 = vrot.slane %v172_v9, 5  ;;  %v209_v26 = vrot.slane %v172_v9, 6 }
  0xf2   :  { %v3064_v23 = vsel %vm183_vm2, %v186_v16, %v177_v6  ;;  %v3067_v24 = vsel %vm183_vm2, %v189_v17, %v191_v10  ;;  %v3070_v25 = vsel %vm183_vm2, %v194_v18, %v196_v11  ;;  %v214_v29 = vrot.slane %v172_v9, 7 }
  0xf3   :  { %2784 = vpow2.f32 %v2358_v19  ;;  %v3073_v27 = vsel %vm183_vm2, %v199_v20, %v201_v12  ;;  %v3076_v28 = vsel %vm183_vm2, %v204_v21, %v206_v13  ;;  %v3079_v30 = vsel %vm183_vm2, %v209_v26, %v211_v14  ;;  %v3197_v26 = vld [vmem:[#allocation7 + $0x10] sm:$0xff] }
  0xf4   :  { %v3082_v31 = vsel %vm183_vm2, %v214_v29, %v216_v22  ;;  %2786 = vtanh.f32 %v184_v15  ;;  %v3201_v29 = vld [vmem:[#allocation7 + $0x8] sm:$0xff] }
 0x100   :  { %v2785_v32 = vpop.eup %2784 }
 0x101   :  { %v228_v33 = vadd.f32 1.0, %v2785_v32  ;;  %v2787_v37 = vpop.eup %2786  ;;  %v3205_v32 = vld [vmem:[#allocation7] sm:$0xff] }
 0x103   :  { %2788 = vrcp.f32 %v228_v33 }
 0x110   :  { %v2789_v38 = vpop.eup %2788 }
 0x111   :  { %v231_v39 = vsel %vm3084_vm5, %v2787_v37, %v2789_v38 }
 0x112   :  { %234 = vrot.lane.b32.xlu0 %v231_v39, %s2990_s0  ;;  %v232_v42 = vmul.f32 0.0, %v231_v39 }
 0x184   :  { %v235_v40 = vpop.permute.xlu0 %234 }
 0x185   :  { %v237_v41 = vmul.f32 %v235_v40, %v231_v39 }
 0x187   :  { %239 = vrot.lane.b32.xlu0 %v237_v41, %s2991_s5 }
 0x1f9   :  { %v240_v43 = vpop.permute.xlu0 %239 }
 0x1fa   :  { %v3092_v44 = vadd.f32 %v240_v43, %v232_v42 }
 0x1fc   :  { %2790 = vtanh.f32 %v3092_v44 }
 0x209   :  { %v2791_v54 = vpop.eup %2790 }
 0x20a   :  { %245 = vrot.lane.b32.xlu1 %v2791_v54, %s2990_s0 }
 0x27c   :  { %v246_v55 = vpop.permute.xlu1 %245 }
 0x27d   :  { %v248_v56 = vmul.f32 %v246_v55, %v231_v39 }
 0x27f   :  { %256 = vrot.lane.b32.xlu1 %v248_v56, %s2991_s5 }
 0x2f1   :  { %v257_v57 = vpop.permute.xlu1 %256 }
 0x2f2   :  { %2531 = vmatmul.mubr.msk.f32.vlgmr.msra.gmra.mxu1 %vm258_vm7, %v257_v57  ;;  %2542 = vmatmul.mubr.msk.f32.vlgmr.msra.gmra.mxu0 %vm258_vm7, %v257_v57 }
 0x2f3   :  { %2545 = vmatpush3.msra.mxu1 %v3098_v45  ;;  %2563 = vmatprep.mubr.msk.f32.mxu0 %vm2993_vm6, %v2992_v47 }
 0x2f4   :  { %2546 = vmatprep.subr.mxu1 %v2992_v47  ;;  %2552 = vmatprep.mubr.msk.f32.mxu1 %vm2993_vm6, %v2992_v47 }
 0x2f5   :  { %2547 = vmatpush3.msra.mxu1 %v3110_v48 }
 0x2f6   :  { %2548 = vmatprep.subr.mxu1 %v2992_v47 }
 0x2f7   :  { %2549 = vmatpush3.msra.mxu1 %v3124_v50 }
 0x2f8   :  { %2550 = vmatprep.subr.mxu1 %v2992_v47 }
 0x2f9   :  { %2551 = vmatpush3.msra.mxu1 %v3138_v52 }
 0x2fa   :  { %2566 = vmatprep.subr.mxu1 %v2992_v47 }
 0x3b2   :  { %v327_v59 = vpop.f32.mrf.mxu1  ;;  %v422_v60 = vpop.f32.mrf.mxu0 }
 0x3b3   :  { %v328_v61 = vadd.f32 %v3176_v58, %v327_v59  ;;  %v426_v62 = vadd.f32 %v422_v60, %v3064_v23  ;;  %v3195_v23 = vld [vmem:[#allocation7 + $0x18] sm:$0xff] }
 0x3b4   :  { %v2532_v63 = vpop.f32.mrf.mxu1  ;;  %v2543_v0 = vpop.f32.mrf.mxu0  ;;  %2556 = vmatpush3.msra.mxu0 %v3195_v23 }
 0x3b5   :  { %v2361_v1 = vmul.f32 -1.442695, %v328_v61  ;;  %v2363_v2 = vmul.f32 -1.442695, %v426_v62  ;;  %2557 = vmatprep.subr.mxu0 %v2992_v47 }
 0x3b6   :  { %2558 = vmatpush3.msra.mxu0 %v3197_v26 }
 0x3b7   :  { %2792 = vpow2.f32 %v2361_v1  ;;  %2559 = vmatprep.subr.mxu0 %v2992_v47 }
 0x3b8   :  { %2794 = vpow2.f32 %v2363_v2  ;;  %2560 = vmatpush3.msra.mxu0 %v3201_v29 }
 0x3b9   :  { %2796 = vtanh.f32 %v328_v61  ;;  %2561 = vmatprep.subr.mxu0 %v2992_v47 }
 0x3ba   :  { %2798 = vtanh.f32 %v426_v62  ;;  %2562 = vmatpush3.msra.mxu0 %v3205_v32 }
 0x3bb   :  { %2577 = vmatprep.subr.mxu0 %v2992_v47 }
 0x3c4   :  { %v2793_v3 = vpop.eup %2792 }
 0x3c5   :  { %v2795_v4 = vpop.eup %2794  ;;  %v335_v5 = vadd.f32 1.0, %v2793_v3 }
 0x3c6   :  { %v431_v6 = vadd.f32 1.0, %v2795_v4  ;;  %v2797_v7 = vpop.eup %2796 }
 0x3c7   :  { %2800 = vrcp.f32 %v335_v5  ;;  %v2799_v8 = vpop.eup %2798 }
 0x3c8   :  { %2802 = vrcp.f32 %v431_v6 }
 0x3d4   :  { %v2801_v9 = vpop.eup %2800 }
 0x3d5   :  { %v2803_v10 = vpop.eup %2802  ;;  %v338_v11 = vsel %vm3084_vm5, %v2797_v7, %v2801_v9 }
 0x3d6   :  { %v434_v12 = vsel %vm3084_vm5, %v2799_v8, %v2803_v10  ;;  %341 = vrot.lane.b32.xlu1 %v338_v11, %s2990_s0  ;;  %v339_v17 = vmul.f32 0.0, %v338_v11 }
 0x3d7   :  { %437 = vrot.lane.b32.xlu0 %v434_v12, %s2990_s0  ;;  %v435_v18 = vmul.f32 %v434_v12, %v3092_v44 }
 0x448   :  { %v342_v13 = vpop.permute.xlu1 %341 }
 0x449   :  { %v438_v14 = vpop.permute.xlu0 %437  ;;  %v344_v15 = vmul.f32 %v342_v13, %v338_v11 }
 0x44a   :  { %v440_v16 = vmul.f32 %v438_v14, %v434_v12 }
 0x44b   :  { %346 = vrot.lane.b32.xlu1 %v344_v15, %s2991_s5 }
 0x44c   :  { %442 = vrot.lane.b32.xlu0 %v440_v16, %s2991_s5 }
 0x4bd   :  { %v347_v19 = vpop.permute.xlu1 %346 }
 0x4be   :  { %v443_v20 = vpop.permute.xlu0 %442  ;;  %v3189_v21 = vadd.f32 %v347_v19, %v339_v17 }
 0x4bf   :  { %v3191_v22 = vadd.f32 %v443_v20, %v435_v18 }
 0x4c0   :  { %2804 = vtanh.f32 %v3189_v21 }
 0x4c1   :  { %2806 = vtanh.f32 %v3191_v22 }
 0x4cd   :  { %v2805_v33 = vpop.eup %2804 }
 0x4ce   :  { %v2807_v34 = vpop.eup %2806  ;;  %352 = vrot.lane.b32.xlu1 %v2805_v33, %s2990_s0 }
 0x4cf   :  { %448 = vrot.lane.b32.xlu0 %v2807_v34, %s2990_s0 }
 0x540   :  { %v353_v35 = vpop.permute.xlu1 %352 }
 0x541   :  { %v449_v37 = vpop.permute.xlu0 %448  ;;  %v355_v38 = vmul.f32 %v353_v35, %v338_v11 }
 0x542   :  { %v451_v39 = vmul.f32 %v449_v37, %v434_v12 }
 0x543   :  { %528 = vrot.lane.b32.xlu1 %v355_v38, %s2991_s5 }
 0x544   :  { %453 = vrot.lane.b32.xlu0 %v451_v39, %s2991_s5 }
 0x5b5   :  { %v529_v40 = vpop.permute.xlu1 %528 }
 0x5b6   :  { %v454_v41 = vpop.permute.xlu0 %453  ;;  %2564 = vmatmul.mubr.msk.f32.vlgmr.msra.gmra.mxu0 %vm258_vm7, %v529_v40 }
 0x5b7   :  { %2553 = vmatmul.mubr.msk.f32.vlgmr.msra.gmra.mxu1 %vm258_vm7, %v454_v41  ;;  %2578 = vmatpush3.msra.mxu0 %v3098_v45 }
 0x5b8   :  { %2567 = vmatpush3.msra.mxu1 %v3103_v46  ;;  %2574 = vmatprep.mubr.msk.f32.mxu1 %vm2993_vm6, %v2992_v47 }
 0x5b9   :  { %2568 = vmatprep.subr.mxu1 %v2992_v47  ;;  %2579 = vmatprep.subr.mxu0 %v2992_v47 }
 0x5ba   :  { %2569 = vmatpush3.msra.mxu1 %v3115_v49  ;;  %2580 = vmatpush3.msra.mxu0 %v3110_v48 }
 0x5bb   :  { %2570 = vmatprep.subr.mxu1 %v2992_v47  ;;  %2581 = vmatprep.subr.mxu0 %v2992_v47 }
 0x5bc   :  { %2571 = vmatpush3.msra.mxu1 %v3129_v51  ;;  %2582 = vmatpush3.msra.mxu0 %v3124_v50 }
 0x5bd   :  { %2572 = vmatprep.subr.mxu1 %v2992_v47  ;;  %2583 = vmatprep.subr.mxu0 %v2992_v47 }
 0x5be   :  { %2573 = vmatpush3.msra.mxu1 %v3145_v53  ;;  %2584 = vmatpush3.msra.mxu0 %v3138_v52 }
 0x5bf   :  { %2575 = vmatmul.mubr.msk.f32.vlgmr.msra.gmra.mxu1 %vm258_vm7, %v454_v41  ;;  %2588 = vmatprep.subr.mxu1 %v2992_v47 }
 0x5c0   :  { %2589 = vmatpush3.msra.mxu1 %v3195_v23  ;;  %2596 = vmatprep.mubr.msk.f32.mxu1 %vm2993_vm6, %v2992_v47 }
 0x5c1   :  { %2590 = vmatprep.subr.mxu1 %v2992_v47  ;;  %2585 = vmatprep.mubr.msk.f32.mxu0 %vm2993_vm6, %v2992_v47 }
 0x5c2   :  { %2591 = vmatpush3.msra.mxu1 %v3197_v26  ;;  %2599 = vmatprep.subr.mxu0 %v2992_v47 }
 0x5c3   :  { %2592 = vmatprep.subr.mxu1 %v2992_v47 }
 0x5c4   :  { %2593 = vmatpush3.msra.mxu1 %v3201_v29 }
 0x5c5   :  { %2594 = vmatprep.subr.mxu1 %v2992_v47 }
 0x5c6   :  { %2595 = vmatpush3.msra.mxu1 %v3205_v32 }
 0x5c7   :  { %2610 = vmatprep.subr.mxu1 %v2992_v47 }
 0x676   :  { %v598_v42 = vpop.f32.mrf.mxu0 }
 0x677   :  { %v523_v43 = vpop.f32.mrf.mxu1 }
 0x678   :  { %v524_v44 = vadd.f32 %v3176_v58, %v523_v43  ;;  %v2565_v54 = vpop.f32.mrf.mxu0 }
 0x679   :  { %v2554_v55 = vpop.f32.mrf.mxu1 }
 0x67a   :  { %v602_v56 = vadd.f32 %v598_v42, %v524_v44 }
 0x67c   :  { %v2366_v57 = vmul.f32 -1.442695, %v602_v56 }
 0x67e   :  { %2808 = vpow2.f32 %v2366_v57 }
 0x67f   :  { %v694_v59 = vpop.f32.mrf.mxu1 }
 0x680   :  { %v698_v60 = vadd.f32 %v694_v59, %v3067_v24 }
 0x681   :  { %v2576_v61 = vpop.f32.mrf.mxu1 }
 0x682   :  { %v2368_v62 = vmul.f32 -1.442695, %v698_v60 }
 0x684   :  { %2810 = vpow2.f32 %v2368_v62 }
 0x685   :  { %2812 = vtanh.f32 %v602_v56 }
 0x68b   :  { %v2809_v63 = vpop.eup %2808 }
 0x68c   :  { %v607_v0 = vadd.f32 1.0, %v2809_v63 }
 0x68e   :  { %2814 = vrcp.f32 %v607_v0 }
 0x68f   :  { %2816 = vtanh.f32 %v698_v60 }
 0x691   :  { %v2811_v1 = vpop.eup %2810 }
 0x692   :  { %v703_v2 = vadd.f32 1.0, %v2811_v1  ;;  %v2813_v3 = vpop.eup %2812 }
 0x694   :  { %2818 = vrcp.f32 %v703_v2 }
 0x69b   :  { %v2815_v4 = vpop.eup %2814 }
 0x69c   :  { %v610_v5 = vsel %vm3084_vm5, %v2813_v3, %v2815_v4  ;;  %v2817_v6 = vpop.eup %2816 }
 0x69d   :  { %613 = vrot.lane.b32.xlu1 %v610_v5, %s2990_s0  ;;  %v611_v12 = vmul.f32 %v610_v5, %v3189_v21 }
 0x6a1   :  { %v2819_v24 = vpop.eup %2818 }
 0x6a2   :  { %v706_v7 = vsel %vm3084_vm5, %v2817_v6, %v2819_v24 }
 0x6a3   :  { %709 = vrot.lane.b32.xlu0 %v706_v7, %s2990_s0  ;;  %v707_v15 = vmul.f32 %v706_v7, %v3191_v22 }
 0x70f   :  { %v614_v8 = vpop.permute.xlu1 %613 }
 0x710   :  { %v616_v9 = vmul.f32 %v614_v8, %v610_v5 }
 0x712   :  { %618 = vrot.lane.b32.xlu1 %v616_v9, %s2991_s5 }
 0x715   :  { %v710_v10 = vpop.permute.xlu0 %709 }
 0x716   :  { %v712_v11 = vmul.f32 %v710_v10, %v706_v7 }
 0x718   :  { %714 = vrot.lane.b32.xlu0 %v712_v11, %s2991_s5 }
 0x784   :  { %v619_v13 = vpop.permute.xlu1 %618 }
 0x785   :  { %v3259_v14 = vadd.f32 %v619_v13, %v611_v12 }
 0x787   :  { %2820 = vtanh.f32 %v3259_v14 }
 0x78a   :  { %v715_v16 = vpop.permute.xlu0 %714 }
 0x78b   :  { %v3263_v17 = vadd.f32 %v715_v16, %v707_v15 }
 0x78d   :  { %2822 = vtanh.f32 %v3263_v17 }
 0x794   :  { %v2821_v18 = vpop.eup %2820 }
 0x795   :  { %624 = vrot.lane.b32.xlu1 %v2821_v18, %s2990_s0 }
 0x79a   :  { %v2823_v19 = vpop.eup %2822 }
 0x79b   :  { %720 = vrot.lane.b32.xlu0 %v2823_v19, %s2990_s0 }
 0x807   :  { %v625_v20 = vpop.permute.xlu1 %624 }
 0x808   :  { %v627_v21 = vmul.f32 %v625_v20, %v610_v5 }
 0x80a   :  { %800 = vrot.lane.b32.xlu1 %v627_v21, %s2991_s5 }
 0x80d   :  { %v721_v33 = vpop.permute.xlu0 %720 }
 0x80e   :  { %v723_v34 = vmul.f32 %v721_v33, %v706_v7 }
 0x810   :  { %725 = vrot.lane.b32.xlu0 %v723_v34, %s2991_s5 }
 0x87c   :  { %v801_v22 = vpop.permute.xlu1 %800 }
 0x87d   :  { %2597 = vmatmul.mubr.msk.f32.vlgmr.msra.gmra.mxu1 %vm258_vm7, %v801_v22 }
 0x87e   :  { %2611 = vmatpush3.msra.mxu1 %v3098_v45  ;;  %2618 = vmatprep.mubr.msk.f32.mxu1 %vm2993_vm6, %v2992_v47 }
 0x87f   :  { %2612 = vmatprep.subr.mxu1 %v2992_v47 }
 0x880   :  { %2613 = vmatpush3.msra.mxu1 %v3110_v48 }
 0x881   :  { %2614 = vmatprep.subr.mxu1 %v2992_v47 }
 0x882   :  { %v726_v35 = vpop.permute.xlu0 %725  ;;  %2615 = vmatpush3.msra.mxu1 %v3124_v50 }
 0x883   :  { %2586 = vmatmul.mubr.msk.f32.vlgmr.msra.gmra.mxu0 %vm258_vm7, %v726_v35  ;;  %2616 = vmatprep.subr.mxu1 %v2992_v47 }
 0x884   :  { %2600 = vmatpush3.msra.mxu0 %v3103_v46  ;;  %2607 = vmatprep.mubr.msk.f32.mxu0 %vm2993_vm6, %v2992_v47 }
 0x885   :  { %2601 = vmatprep.subr.mxu0 %v2992_v47  ;;  %2617 = vmatpush3.msra.mxu1 %v3138_v52 }
 0x886   :  { %2602 = vmatpush3.msra.mxu0 %v3115_v49  ;;  %2632 = vmatprep.subr.mxu1 %v2992_v47 }
 0x887   :  { %2603 = vmatprep.subr.mxu0 %v2992_v47 }
 0x888   :  { %2604 = vmatpush3.msra.mxu0 %v3129_v51 }
 0x889   :  { %2605 = vmatprep.subr.mxu0 %v2992_v47 }
 0x88a   :  { %2606 = vmatpush3.msra.mxu0 %v3145_v53 }
 0x88b   :  { %2608 = vmatmul.mubr.msk.f32.vlgmr.msra.gmra.mxu0 %vm258_vm7, %v726_v35  ;;  %2621 = vmatprep.subr.mxu0 %v2992_v47 }
 0x88c   :  { %2622 = vmatpush3.msra.mxu0 %v3195_v23  ;;  %2629 = vmatprep.mubr.msk.f32.mxu0 %vm2993_vm6, %v2992_v47 }
 0x88d   :  { %2623 = vmatprep.subr.mxu0 %v2992_v47 }
 0x88e   :  { %2624 = vmatpush3.msra.mxu0 %v3197_v26 }
 0x88f   :  { %2625 = vmatprep.subr.mxu0 %v2992_v47 }
 0x890   :  { %2626 = vmatpush3.msra.mxu0 %v3201_v29 }
 0x891   :  { %2627 = vmatprep.subr.mxu0 %v2992_v47 }
 0x892   :  { %2628 = vmatpush3.msra.mxu0 %v3205_v32 }
 0x893   :  { %2643 = vmatprep.subr.mxu0 %v2992_v47 }
 0x93d   :  { %v870_v37 = vpop.f32.mrf.mxu1 }
 0x93f   :  { %v2598_v38 = vpop.f32.mrf.mxu1 }
 0x943   :  { %v795_v39 = vpop.f32.mrf.mxu0 }
 0x944   :  { %v796_v40 = vadd.f32 %v3176_v58, %v795_v39 }
 0x945   :  { %v2587_v41 = vpop.f32.mrf.mxu0 }
 0x946   :  { %v874_v42 = vadd.f32 %v870_v37, %v796_v40 }
 0x948   :  { %v2371_v43 = vmul.f32 -1.442695, %v874_v42 }
 0x94a   :  { %2824 = vpow2.f32 %v2371_v43 }
 0x94b   :  { %v966_v44 = vpop.f32.mrf.mxu0 }
 0x94c   :  { %v970_v54 = vadd.f32 %v966_v44, %v3070_v25 }
 0x94d   :  { %v2609_v55 = vpop.f32.mrf.mxu0 }
 0x94e   :  { %v2373_v56 = vmul.f32 -1.442695, %v970_v54 }
 0x950   :  { %2826 = vpow2.f32 %v2373_v56 }
 0x951   :  { %2828 = vtanh.f32 %v874_v42 }
 0x957   :  { %v2825_v57 = vpop.eup %2824 }
 0x958   :  { %v879_v59 = vadd.f32 1.0, %v2825_v57 }
 0x95a   :  { %2830 = vrcp.f32 %v879_v59 }
 0x95b   :  { %2832 = vtanh.f32 %v970_v54 }
 0x95d   :  { %v2827_v60 = vpop.eup %2826 }
 0x95e   :  { %v975_v61 = vadd.f32 1.0, %v2827_v60  ;;  %v2829_v62 = vpop.eup %2828 }
 0x960   :  { %2834 = vrcp.f32 %v975_v61 }
 0x967   :  { %v2831_v63 = vpop.eup %2830 }
 0x968   :  { %v882_v0 = vsel %vm3084_vm5, %v2829_v62, %v2831_v63  ;;  %v2833_v1 = vpop.eup %2832 }
 0x969   :  { %885 = vrot.lane.b32.xlu1 %v882_v0, %s2990_s0  ;;  %v883_v24 = vmul.f32 %v882_v0, %v3259_v14 }
 0x96d   :  { %v2835_v25 = vpop.eup %2834 }
 0x96e   :  { %v978_v2 = vsel %vm3084_vm5, %v2833_v1, %v2835_v25 }
 0x96f   :  { %981 = vrot.lane.b32.xlu0 %v978_v2, %s2990_s0  ;;  %v979_v9 = vmul.f32 %v978_v2, %v3263_v17 }
 0x9db   :  { %v886_v3 = vpop.permute.xlu1 %885 }
 0x9dc   :  { %v888_v4 = vmul.f32 %v886_v3, %v882_v0 }
 0x9de   :  { %890 = vrot.lane.b32.xlu1 %v888_v4, %s2991_s5 }
 0x9e1   :  { %v982_v5 = vpop.permute.xlu0 %981 }
 0x9e2   :  { %v984_v6 = vmul.f32 %v982_v5, %v978_v2 }
 0x9e4   :  { %986 = vrot.lane.b32.xlu0 %v984_v6, %s2991_s5 }
 0xa50   :  { %v891_v7 = vpop.permute.xlu1 %890 }
 0xa51   :  { %v3314_v8 = vadd.f32 %v891_v7, %v883_v24 }
 0xa53   :  { %2836 = vtanh.f32 %v3314_v8 }
 0xa56   :  { %v987_v10 = vpop.permute.xlu0 %986 }
 0xa57   :  { %v3318_v11 = vadd.f32 %v987_v10, %v979_v9 }
 0xa59   :  { %2838 = vtanh.f32 %v3318_v11 }
 0xa60   :  { %v2837_v12 = vpop.eup %2836 }
 0xa61   :  { %896 = vrot.lane.b32.xlu1 %v2837_v12, %s2990_s0 }
 0xa66   :  { %v2839_v13 = vpop.eup %2838 }
 0xa67   :  { %992 = vrot.lane.b32.xlu0 %v2839_v13, %s2990_s0 }
 0xad3   :  { %v897_v15 = vpop.permute.xlu1 %896 }
 0xad4   :  { %v899_v14 = vmul.f32 %v897_v15, %v882_v0 }
 0xad6   :  { %1072 = vrot.lane.b32.xlu1 %v899_v14, %s2991_s5 }
 0xad9   :  { %v993_v16 = vpop.permute.xlu0 %992 }
 0xada   :  { %v995_v18 = vmul.f32 %v993_v16, %v978_v2 }
 0xadc   :  { %997 = vrot.lane.b32.xlu0 %v995_v18, %s2991_s5 }
 0xb48   :  { %v1073_v17 = vpop.permute.xlu1 %1072 }
 0xb49   :  { %2630 = vmatmul.mubr.msk.f32.vlgmr.msra.gmra.mxu0 %vm258_vm7, %v1073_v17 }
 0xb4a   :  { %2644 = vmatpush3.msra.mxu0 %v3098_v45  ;;  %2651 = vmatprep.mubr.msk.f32.mxu0 %vm2993_vm6, %v2992_v47 }
 0xb4b   :  { %2645 = vmatprep.subr.mxu0 %v2992_v47 }
 0xb4c   :  { %2646 = vmatpush3.msra.mxu0 %v3110_v48 }
 0xb4d   :  { %2647 = vmatprep.subr.mxu0 %v2992_v47 }
 0xb4e   :  { %v998_v19 = vpop.permute.xlu0 %997  ;;  %2648 = vmatpush3.msra.mxu0 %v3124_v50 }
 0xb4f   :  { %2619 = vmatmul.mubr.msk.f32.vlgmr.msra.gmra.mxu1 %vm258_vm7, %v998_v19  ;;  %2649 = vmatprep.subr.mxu0 %v2992_v47 }
 0xb50   :  { %2633 = vmatpush3.msra.mxu1 %v3103_v46  ;;  %2640 = vmatprep.mubr.msk.f32.mxu1 %vm2993_vm6, %v2992_v47 }
 0xb51   :  { %2634 = vmatprep.subr.mxu1 %v2992_v47  ;;  %2650 = vmatpush3.msra.mxu0 %v3138_v52 }
 0xb52   :  { %2635 = vmatpush3.msra.mxu1 %v3115_v49  ;;  %2665 = vmatprep.subr.mxu0 %v2992_v47 }
 0xb53   :  { %2636 = vmatprep.subr.mxu1 %v2992_v47 }
 0xb54   :  { %2637 = vmatpush3.msra.mxu1 %v3129_v51 }
 0xb55   :  { %2638 = vmatprep.subr.mxu1 %v2992_v47 }
 0xb56   :  { %2639 = vmatpush3.msra.mxu1 %v3145_v53 }
 0xb57   :  { %2641 = vmatmul.mubr.msk.f32.vlgmr.msra.gmra.mxu1 %vm258_vm7, %v998_v19  ;;  %2654 = vmatprep.subr.mxu1 %v2992_v47 }
 0xb58   :  { %2655 = vmatpush3.msra.mxu1 %v3195_v23  ;;  %2662 = vmatprep.mubr.msk.f32.mxu1 %vm2993_vm6, %v2992_v47 }
 0xb59   :  { %2656 = vmatprep.subr.mxu1 %v2992_v47 }
 0xb5a   :  { %2657 = vmatpush3.msra.mxu1 %v3197_v26 }
 0xb5b   :  { %2658 = vmatprep.subr.mxu1 %v2992_v47 }
 0xb5c   :  { %2659 = vmatpush3.msra.mxu1 %v3201_v29 }
 0xb5d   :  { %2660 = vmatprep.subr.mxu1 %v2992_v47 }
 0xb5e   :  { %2661 = vmatpush3.msra.mxu1 %v3205_v32 }
 0xb5f   :  { %2676 = vmatprep.subr.mxu1 %v2992_v47 }
 0xc09   :  { %v1142_v20 = vpop.f32.mrf.mxu0 }
 0xc0b   :  { %v2631_v21 = vpop.f32.mrf.mxu0 }
 0xc0f   :  { %v1067_v33 = vpop.f32.mrf.mxu1 }
 0xc10   :  { %v1068_v34 = vadd.f32 %v3176_v58, %v1067_v33 }
 0xc11   :  { %v2620_v22 = vpop.f32.mrf.mxu1 }
 0xc12   :  { %v1146_v35 = vadd.f32 %v1142_v20, %v1068_v34 }
 0xc14   :  { %v2376_v37 = vmul.f32 -1.442695, %v1146_v35 }
 0xc16   :  { %2840 = vpow2.f32 %v2376_v37 }
 0xc17   :  { %v1238_v38 = vpop.f32.mrf.mxu1 }
 0xc18   :  { %v1242_v39 = vadd.f32 %v1238_v38, %v3073_v27 }
 0xc19   :  { %v2642_v40 = vpop.f32.mrf.mxu1 }
 0xc1a   :  { %v2378_v41 = vmul.f32 -1.442695, %v1242_v39 }
 0xc1c   :  { %2842 = vpow2.f32 %v2378_v41 }
 0xc1d   :  { %2844 = vtanh.f32 %v1146_v35 }
 0xc23   :  { %v2841_v42 = vpop.eup %2840 }
 0xc24   :  { %v1151_v43 = vadd.f32 1.0, %v2841_v42 }
 0xc26   :  { %2846 = vrcp.f32 %v1151_v43 }
 0xc27   :  { %2848 = vtanh.f32 %v1242_v39 }
 0xc29   :  { %v2843_v44 = vpop.eup %2842 }
 0xc2a   :  { %v1247_v54 = vadd.f32 1.0, %v2843_v44  ;;  %v2845_v55 = vpop.eup %2844 }
 0xc2c   :  { %2850 = vrcp.f32 %v1247_v54 }
 0xc33   :  { %v2847_v56 = vpop.eup %2846 }
 0xc34   :  { %v1154_v57 = vsel %vm3084_vm5, %v2845_v55, %v2847_v56  ;;  %v2849_v59 = vpop.eup %2848 }
 0xc35   :  { %1157 = vrot.lane.b32.xlu1 %v1154_v57, %s2990_s0  ;;  %v1155_v1 = vmul.f32 %v1154_v57, %v3314_v8 }
 0xc39   :  { %v2851_v27 = vpop.eup %2850 }
 0xc3a   :  { %v1250_v60 = vsel %vm3084_vm5, %v2849_v59, %v2851_v27 }
 0xc3b   :  { %1253 = vrot.lane.b32.xlu0 %v1250_v60, %s2990_s0  ;;  %v1251_v3 = vmul.f32 %v1250_v60, %v3318_v11 }
 0xca7   :  { %v1158_v61 = vpop.permute.xlu1 %1157 }
 0xca8   :  { %v1160_v62 = vmul.f32 %v1158_v61, %v1154_v57 }
 0xcaa   :  { %1162 = vrot.lane.b32.xlu1 %v1160_v62, %s2991_s5 }
 0xcad   :  { %v1254_v63 = vpop.permute.xlu0 %1253 }
 0xcae   :  { %v1256_v0 = vmul.f32 %v1254_v63, %v1250_v60 }
 0xcb0   :  { %1258 = vrot.lane.b32.xlu0 %v1256_v0, %s2991_s5 }
 0xd1c   :  { %v1163_v25 = vpop.permute.xlu1 %1162 }
 0xd1d   :  { %v3369_v2 = vadd.f32 %v1163_v25, %v1155_v1 }
 0xd1f   :  { %2852 = vtanh.f32 %v3369_v2 }
 0xd22   :  { %v1259_v4 = vpop.permute.xlu0 %1258 }
 0xd23   :  { %v3373_v5 = vadd.f32 %v1259_v4, %v1251_v3 }
 0xd25   :  { %2854 = vtanh.f32 %v3373_v5 }
 0xd2c   :  { %v2853_v6 = vpop.eup %2852 }
 0xd2d   :  { %1168 = vrot.lane.b32.xlu1 %v2853_v6, %s2990_s0 }
 0xd32   :  { %v2855_v24 = vpop.eup %2854 }
 0xd33   :  { %1264 = vrot.lane.b32.xlu0 %v2855_v24, %s2990_s0 }
 0xd9f   :  { %v1169_v7 = vpop.permute.xlu1 %1168 }
 0xda0   :  { %v1171_v8 = vmul.f32 %v1169_v7, %v1154_v57 }
 0xda2   :  { %1344 = vrot.lane.b32.xlu1 %v1171_v8, %s2991_s5 }
 0xda5   :  { %v1265_v9 = vpop.permute.xlu0 %1264 }
 0xda6   :  { %v1267_v10 = vmul.f32 %v1265_v9, %v1250_v60 }
 0xda8   :  { %1269 = vrot.lane.b32.xlu0 %v1267_v10, %s2991_s5 }
 0xe14   :  { %v1345_v11 = vpop.permute.xlu1 %1344 }
 0xe15   :  { %2663 = vmatmul.mubr.msk.f32.vlgmr.msra.gmra.mxu1 %vm258_vm7, %v1345_v11 }
 0xe16   :  { %2677 = vmatpush3.msra.mxu1 %v3098_v45  ;;  %2684 = vmatprep.mubr.msk.f32.mxu1 %vm2993_vm6, %v2992_v47 }
 0xe17   :  { %2678 = vmatprep.subr.mxu1 %v2992_v47 }
 0xe18   :  { %2679 = vmatpush3.msra.mxu1 %v3110_v48 }
 0xe19   :  { %2680 = vmatprep.subr.mxu1 %v2992_v47 }
 0xe1a   :  { %v1270_v12 = vpop.permute.xlu0 %1269  ;;  %2681 = vmatpush3.msra.mxu1 %v3124_v50 }
 0xe1b   :  { %2652 = vmatmul.mubr.msk.f32.vlgmr.msra.gmra.mxu0 %vm258_vm7, %v1270_v12  ;;  %2682 = vmatprep.subr.mxu1 %v2992_v47 }
 0xe1c   :  { %2666 = vmatpush3.msra.mxu0 %v3103_v46  ;;  %2673 = vmatprep.mubr.msk.f32.mxu0 %vm2993_vm6, %v2992_v47 }
 0xe1d   :  { %2667 = vmatprep.subr.mxu0 %v2992_v47  ;;  %2683 = vmatpush3.msra.mxu1 %v3138_v52 }
 0xe1e   :  { %2668 = vmatpush3.msra.mxu0 %v3115_v49  ;;  %2698 = vmatprep.subr.mxu1 %v2992_v47 }
 0xe1f   :  { %2669 = vmatprep.subr.mxu0 %v2992_v47 }
 0xe20   :  { %2670 = vmatpush3.msra.mxu0 %v3129_v51 }
 0xe21   :  { %2671 = vmatprep.subr.mxu0 %v2992_v47 }
 0xe22   :  { %2672 = vmatpush3.msra.mxu0 %v3145_v53 }
 0xe23   :  { %2674 = vmatmul.mubr.msk.f32.vlgmr.msra.gmra.mxu0 %vm258_vm7, %v1270_v12  ;;  %2687 = vmatprep.subr.mxu0 %v2992_v47 }
 0xe24   :  { %2688 = vmatpush3.msra.mxu0 %v3195_v23  ;;  %2695 = vmatprep.mubr.msk.f32.mxu0 %vm2993_vm6, %v2992_v47 }
 0xe25   :  { %2689 = vmatprep.subr.mxu0 %v2992_v47 }
 0xe26   :  { %2690 = vmatpush3.msra.mxu0 %v3197_v26 }
 0xe27   :  { %2691 = vmatprep.subr.mxu0 %v2992_v47 }
 0xe28   :  { %2692 = vmatpush3.msra.mxu0 %v3201_v29 }
 0xe29   :  { %2693 = vmatprep.subr.mxu0 %v2992_v47 }
 0xe2a   :  { %2694 = vmatpush3.msra.mxu0 %v3205_v32 }
 0xe2b   :  { %2709 = vmatprep.subr.mxu0 %v2992_v47 }
 0xed5   :  { %v1414_v13 = vpop.f32.mrf.mxu1 }
 0xed7   :  { %v2664_v15 = vpop.f32.mrf.mxu1 }
 0xedb   :  { %v1339_v14 = vpop.f32.mrf.mxu0 }
 0xedc   :  { %v1340_v16 = vadd.f32 %v3176_v58, %v1339_v14 }
 0xedd   :  { %v2653_v18 = vpop.f32.mrf.mxu0 }
 0xede   :  { %v1418_v17 = vadd.f32 %v1414_v13, %v1340_v16 }
 0xee0   :  { %v2381_v19 = vmul.f32 -1.442695, %v1418_v17 }
 0xee2   :  { %2856 = vpow2.f32 %v2381_v19 }
 0xee3   :  { %v1510_v20 = vpop.f32.mrf.mxu0 }
 0xee4   :  { %v1514_v21 = vadd.f32 %v1510_v20, %v3076_v28 }
 0xee5   :  { %v2675_v33 = vpop.f32.mrf.mxu0 }
 0xee6   :  { %v2383_v34 = vmul.f32 -1.442695, %v1514_v21 }
 0xee8   :  { %2858 = vpow2.f32 %v2383_v34 }
 0xee9   :  { %2860 = vtanh.f32 %v1418_v17 }
 0xeef   :  { %v2857_v22 = vpop.eup %2856 }
 0xef0   :  { %v1423_v35 = vadd.f32 1.0, %v2857_v22 }
 0xef2   :  { %2862 = vrcp.f32 %v1423_v35 }
 0xef3   :  { %2864 = vtanh.f32 %v1514_v21 }
 0xef5   :  { %v2859_v37 = vpop.eup %2858 }
 0xef6   :  { %v1519_v38 = vadd.f32 1.0, %v2859_v37  ;;  %v2861_v39 = vpop.eup %2860 }
 0xef8   :  { %2866 = vrcp.f32 %v1519_v38 }
 0xeff   :  { %v2863_v40 = vpop.eup %2862 }
 0xf00   :  { %v1426_v41 = vsel %vm3084_vm5, %v2861_v39, %v2863_v40  ;;  %v2865_v42 = vpop.eup %2864 }
 0xf01   :  { %1429 = vrot.lane.b32.xlu1 %v1426_v41, %s2990_s0  ;;  %v1427_v57 = vmul.f32 %v1426_v41, %v3369_v2 }
 0xf05   :  { %v2867_v28 = vpop.eup %2866 }
 0xf06   :  { %v1522_v43 = vsel %vm3084_vm5, %v2865_v42, %v2867_v28 }
 0xf07   :  { %1525 = vrot.lane.b32.xlu0 %v1522_v43, %s2990_s0  ;;  %v1523_v60 = vmul.f32 %v1522_v43, %v3373_v5 }
 0xf73   :  { %v1430_v44 = vpop.permute.xlu1 %1429 }
 0xf74   :  { %v1432_v54 = vmul.f32 %v1430_v44, %v1426_v41  ;;  %v2913_v44 = vld [vmem:[%s3589_s4 + $0x10] sm:$0xff] }
 0xf76   :  { %1434 = vrot.lane.b32.xlu1 %v1432_v54, %s2991_s5 }
 0xf79   :  { %v1526_v55 = vpop.permute.xlu0 %1525 }
 0xf7a   :  { %v1528_v56 = vmul.f32 %v1526_v55, %v1522_v43  ;;  %v2914_v55 = vld [vmem:[%s3589_s4 + $0x8] sm:$0xff] }
 0xf7c   :  { %1530 = vrot.lane.b32.xlu0 %v1528_v56, %s2991_s5  ;;  %v2915_v56 = vld [vmem:[%s3587_s2 + $0x18] sm:$0xff] }
 0xfe8   :  { %v1435_v59 = vpop.permute.xlu1 %1434 }
 0xfe9   :  { %v3424_v27 = vadd.f32 %v1435_v59, %v1427_v57  ;;  %v2916_v57 = vld [vmem:[%s3589_s4] sm:$0xff]  ;;  %v2917_v59 = vld [vmem:[%s3587_s2 + $0x10] sm:$0xff] }
 0xfeb   :  { %2868 = vtanh.f32 %v3424_v27 }
 0xfee   :  { %v1531_v61 = vpop.permute.xlu0 %1530 }
 0xfef   :  { %v3428_v62 = vadd.f32 %v1531_v61, %v1523_v60  ;;  %v2919_v60 = vld [vmem:[%s3587_s2] sm:$0xff] }
 0xff1   :  { %2870 = vtanh.f32 %v3428_v62 }
 0xff8   :  { %v2869_v63 = vpop.eup %2868 }
 0xff9   :  { %1440 = vrot.lane.b32.xlu1 %v2869_v63, %s2990_s0 }
 0xffe   :  { %v2871_v0 = vpop.eup %2870 }
 0xfff   :  { %1536 = vrot.lane.b32.xlu0 %v2871_v0, %s2990_s0 }
0x106b   :  { %v1441_v1 = vpop.permute.xlu1 %1440 }
0x106c   :  { %v1443_v25 = vmul.f32 %v1441_v1, %v1426_v41 }
0x106e   :  { %1616 = vrot.lane.b32.xlu1 %v1443_v25, %s2991_s5 }
0x1071   :  { %v1537_v2 = vpop.permute.xlu0 %1536 }
0x1072   :  { %v1539_v3 = vmul.f32 %v1537_v2, %v1522_v43  ;;  %v2912_v43 = vld [vmem:[%s3589_s4 + $0x18] sm:$0xff] }
0x1074   :  { %1541 = vrot.lane.b32.xlu0 %v1539_v3, %s2991_s5 }
0x10e0   :  { %v1617_v4 = vpop.permute.xlu1 %1616 }
0x10e1   :  { %2696 = vmatmul.mubr.msk.f32.vlgmr.msra.gmra.mxu0 %vm258_vm7, %v1617_v4 }
0x10e2   :  { %2710 = vmatpush3.msra.mxu0 %v3098_v45  ;;  %2717 = vmatprep.mubr.msk.f32.mxu0 %vm2993_vm6, %v2992_v47 }
0x10e3   :  { %2711 = vmatprep.subr.mxu0 %v2992_v47 }
0x10e4   :  { %2712 = vmatpush3.msra.mxu0 %v3110_v48 }
0x10e5   :  { %2713 = vmatprep.subr.mxu0 %v2992_v47 }
0x10e6   :  { %v1542_v5 = vpop.permute.xlu0 %1541  ;;  %2714 = vmatpush3.msra.mxu0 %v3124_v50 }
0x10e7   :  { %2685 = vmatmul.mubr.msk.f32.vlgmr.msra.gmra.mxu1 %vm258_vm7, %v1542_v5  ;;  %2715 = vmatprep.subr.mxu0 %v2992_v47 }
0x10e8   :  { %2699 = vmatpush3.msra.mxu1 %v3103_v46  ;;  %2706 = vmatprep.mubr.msk.f32.mxu1 %vm2993_vm6, %v2992_v47 }
0x10e9   :  { %2700 = vmatprep.subr.mxu1 %v2992_v47  ;;  %2716 = vmatpush3.msra.mxu0 %v3138_v52 }
0x10ea   :  { %2701 = vmatpush3.msra.mxu1 %v3115_v49  ;;  %2731 = vmatprep.subr.mxu0 %v2992_v47 }
0x10eb   :  { %2702 = vmatprep.subr.mxu1 %v2992_v47 }
0x10ec   :  { %2703 = vmatpush3.msra.mxu1 %v3129_v51 }
0x10ed   :  { %2704 = vmatprep.subr.mxu1 %v2992_v47 }
0x10ee   :  { %2705 = vmatpush3.msra.mxu1 %v3145_v53 }
0x10ef   :  { %2707 = vmatmul.mubr.msk.f32.vlgmr.msra.gmra.mxu1 %vm258_vm7, %v1542_v5  ;;  %2720 = vmatprep.subr.mxu1 %v2992_v47 }
0x10f0   :  { %2721 = vmatpush3.msra.mxu1 %v3195_v23  ;;  %2728 = vmatprep.mubr.msk.f32.mxu1 %vm2993_vm6, %v2992_v47 }
0x10f1   :  { %2722 = vmatprep.subr.mxu1 %v2992_v47 }
0x10f2   :  { %2723 = vmatpush3.msra.mxu1 %v3197_v26 }
0x10f3   :  { %2724 = vmatprep.subr.mxu1 %v2992_v47 }
0x10f4   :  { %2725 = vmatpush3.msra.mxu1 %v3201_v29 }
0x10f5   :  { %2726 = vmatprep.subr.mxu1 %v2992_v47 }
0x10f6   :  { %2727 = vmatpush3.msra.mxu1 %v3205_v32 }
0x10f7   :  { %2742 = vmatprep.subr.mxu1 %v2992_v47 }
0x11a1   :  { %v1686_v45 = vpop.f32.mrf.mxu0 }
0x11a3   :  { %v2697_v46 = vpop.f32.mrf.mxu0 }
0x11a7   :  { %v1611_v48 = vpop.f32.mrf.mxu1 }
0x11a8   :  { %v1612_v49 = vadd.f32 %v3176_v58, %v1611_v48 }
0x11a9   :  { %v2686_v50 = vpop.f32.mrf.mxu1 }
0x11aa   :  { %v1690_v51 = vadd.f32 %v1686_v45, %v1612_v49 }
0x11ac   :  { %v2386_v52 = vmul.f32 -1.442695, %v1690_v51 }
0x11ae   :  { %2872 = vpow2.f32 %v2386_v52 }
0x11af   :  { %v1782_v53 = vpop.f32.mrf.mxu1 }
0x11b0   :  { %v1786_v6 = vadd.f32 %v1782_v53, %v3079_v30 }
0x11b1   :  { %v2708_v24 = vpop.f32.mrf.mxu1 }
0x11b2   :  { %v2388_v7 = vmul.f32 -1.442695, %v1786_v6 }
0x11b4   :  { %2874 = vpow2.f32 %v2388_v7 }
0x11b5   :  { %2876 = vtanh.f32 %v1690_v51 }
0x11bb   :  { %v2873_v8 = vpop.eup %2872 }
0x11bc   :  { %v1695_v9 = vadd.f32 1.0, %v2873_v8 }
0x11be   :  { %2878 = vrcp.f32 %v1695_v9 }
0x11bf   :  { %2880 = vtanh.f32 %v1786_v6 }
0x11c1   :  { %v2875_v10 = vpop.eup %2874 }
0x11c2   :  { %v1791_v11 = vadd.f32 1.0, %v2875_v10  ;;  %v2877_v12 = vpop.eup %2876 }
0x11c4   :  { %2882 = vrcp.f32 %v1791_v11 }
0x11cb   :  { %v2879_v58 = vpop.eup %2878 }
0x11cc   :  { %v1698_v13 = vsel %vm3084_vm5, %v2877_v12, %v2879_v58  ;;  %v2881_v15 = vpop.eup %2880 }
0x11cd   :  { %1701 = vrot.lane.b32.xlu1 %v1698_v13, %s2990_s0  ;;  %v1699_v20 = vmul.f32 %v1698_v13, %v3424_v27  ;;  %v2918_v27 = vld [vmem:[%s3587_s2 + $0x8] sm:$0xff] }
0x11d1   :  { %v2883_v30 = vpop.eup %2882 }
0x11d2   :  { %v1794_v14 = vsel %vm3084_vm5, %v2881_v15, %v2883_v30 }
0x11d3   :  { %1797 = vrot.lane.b32.xlu0 %v1794_v14, %s2990_s0  ;;  %v1795_v34 = vmul.f32 %v1794_v14, %v3428_v62 }
0x123f   :  { %v1702_v16 = vpop.permute.xlu1 %1701 }
0x1240   :  { %v1704_v18 = vmul.f32 %v1702_v16, %v1698_v13 }
0x1242   :  { %1706 = vrot.lane.b32.xlu1 %v1704_v18, %s2991_s5 }
0x1245   :  { %v1798_v17 = vpop.permute.xlu0 %1797 }
0x1246   :  { %v1800_v19 = vmul.f32 %v1798_v17, %v1794_v14 }
0x1248   :  { %1802 = vrot.lane.b32.xlu0 %v1800_v19, %s2991_s5 }
0x12b4   :  { %v1707_v21 = vpop.permute.xlu1 %1706 }
0x12b5   :  { %v3479_v33 = vadd.f32 %v1707_v21, %v1699_v20 }
0x12b7   :  { %2884 = vtanh.f32 %v3479_v33 }
0x12ba   :  { %v1803_v22 = vpop.permute.xlu0 %1802 }
0x12bb   :  { %v3483_v35 = vadd.f32 %v1803_v22, %v1795_v34 }
0x12bd   :  { %2886 = vtanh.f32 %v3483_v35 }
0x12c4   :  { %v2885_v37 = vpop.eup %2884 }
0x12c5   :  { %1712 = vrot.lane.b32.xlu1 %v2885_v37, %s2990_s0 }
0x12ca   :  { %v2887_v38 = vpop.eup %2886 }
0x12cb   :  { %1808 = vrot.lane.b32.xlu0 %v2887_v38, %s2990_s0 }
0x1337   :  { %v1713_v39 = vpop.permute.xlu1 %1712 }
0x1338   :  { %v1715_v40 = vmul.f32 %v1713_v39, %v1698_v13 }
0x133a   :  { %1888 = vrot.lane.b32.xlu1 %v1715_v40, %s2991_s5 }
0x133d   :  { %v1809_v41 = vpop.permute.xlu0 %1808 }
0x133e   :  { %v1811_v42 = vmul.f32 %v1809_v41, %v1794_v14 }
0x1340   :  { %1813 = vrot.lane.b32.xlu0 %v1811_v42, %s2991_s5 }
0x13ac   :  { %v1889_v28 = vpop.permute.xlu1 %1888 }
0x13ad   :  { %2729 = vmatmul.mubr.msk.f32.vlgmr.msra.gmra.mxu1 %vm258_vm7, %v1889_v28 }
0x13ae   :  { %2743 = vmatpush3.msra.mxu1 %v2912_v43  ;;  %2750 = vmatprep.mubr.msk.f32.mxu1 %vm2993_vm6, %v2992_v47 }
0x13af   :  { %2744 = vmatprep.subr.mxu1 %v2992_v47 }
0x13b0   :  { %2745 = vmatpush3.msra.mxu1 %v2913_v44 }
0x13b1   :  { %2746 = vmatprep.subr.mxu1 %v2992_v47 }
0x13b2   :  { %v1814_v54 = vpop.permute.xlu0 %1813  ;;  %2747 = vmatpush3.msra.mxu1 %v2914_v55 }
0x13b3   :  { %2718 = vmatmul.mubr.msk.f32.vlgmr.msra.gmra.mxu0 %vm258_vm7, %v1814_v54  ;;  %2748 = vmatprep.subr.mxu1 %v2992_v47 }
0x13b4   :  { %2732 = vmatpush3.msra.mxu0 %v2915_v56  ;;  %2739 = vmatprep.mubr.msk.f32.mxu0 %vm2993_vm6, %v2992_v47  ;;  %v2263_v56 = vld [vmem:[%s3592_s7 + $0x18] sm:$0xff] }
0x13b5   :  { %2733 = vmatprep.subr.mxu0 %v2992_v47  ;;  %2749 = vmatpush3.msra.mxu1 %v2916_v57  ;;  %v2262_v57 = vld [vmem:[%s3592_s7 + $0x10] sm:$0xff] }
0x13b6   :  { %2734 = vmatpush3.msra.mxu0 %v2917_v59  ;;  %2764 = vmatprep.subr.mxu1 %v2992_v47  ;;  %v2260_v59 = vld [vmem:[%s3592_s7] sm:$0xff] }
0x13b7   :  { %2735 = vmatprep.subr.mxu0 %v2992_v47 }
0x13b8   :  { %2736 = vmatpush3.msra.mxu0 %v2918_v27 }
0x13b9   :  { %2737 = vmatprep.subr.mxu0 %v2992_v47 }
0x13ba   :  { %2738 = vmatpush3.msra.mxu0 %v2919_v60 }
0x13bb   :  { %2740 = vmatmul.mubr.msk.f32.vlgmr.msra.gmra.mxu0 %vm258_vm7, %v1814_v54  ;;  %2753 = vmatprep.subr.mxu0 %v2992_v47 }
0x13bc   :  { %2754 = vmatpush3.msra.mxu0 %v3195_v23  ;;  %2761 = vmatprep.mubr.msk.f32.mxu0 %vm2993_vm6, %v2992_v47  ;;  %v2920_v23 = vld [vmem:[%s3591_s6] ss:$0 sm:$0xff] }
0x13bd   :  { %2755 = vmatprep.subr.mxu0 %v2992_v47 }
0x13be   :  { %2756 = vmatpush3.msra.mxu0 %v3197_v26 }
0x13bf   :  { %2757 = vmatprep.subr.mxu0 %v2992_v47 }
0x13c0   :  { %2758 = vmatpush3.msra.mxu0 %v3201_v29 }
0x13c1   :  { %2759 = vmatprep.subr.mxu0 %v2992_v47 }
0x13c2   :  { %2760 = vmatpush3.msra.mxu0 %v3205_v32 }
0x146d   :  { %v1958_v61 = vpop.f32.mrf.mxu1 }
0x146f   :  { %v2730_v62 = vpop.f32.mrf.mxu1 }
0x1473   :  { %v1883_v63 = vpop.f32.mrf.mxu0 }
0x1474   :  { %v1884_v0 = vadd.f32 %v2920_v23, %v1883_v63  ;;  %v2397_v63 = vld [vmem:[#allocation2] ss:$0 sm:$0xff] }
0x1475   :  { %v2719_v1 = vpop.f32.mrf.mxu0 }
0x1476   :  { %v1962_v25 = vadd.f32 %v1958_v61, %v1884_v0 }
0x1478   :  { %v2391_v2 = vmul.f32 -1.442695, %v1962_v25 }
0x147a   :  { %2888 = vpow2.f32 %v2391_v2 }
0x147b   :  { %v2054_v26 = vpop.f32.mrf.mxu0 }
0x147c   :  { %v2058_v3 = vadd.f32 %v2054_v26, %v3082_v31 }
0x147d   :  { %v2741_v29 = vpop.f32.mrf.mxu0 }
0x147e   :  { %v2393_v4 = vmul.f32 -1.442695, %v2058_v3 }
0x1480   :  { %2890 = vpow2.f32 %v2393_v4 }
0x1481   :  { %2892 = vtanh.f32 %v1962_v25 }
0x1487   :  { %v2889_v5 = vpop.eup %2888 }
0x1488   :  { %v1967_v32 = vadd.f32 1.0, %v2889_v5 }
0x148a   :  { %2894 = vrcp.f32 %v1967_v32 }
0x148b   :  { %2896 = vtanh.f32 %v2058_v3 }
0x148d   :  { %v2891_v45 = vpop.eup %2890 }
0x148e   :  { %v2063_v46 = vadd.f32 1.0, %v2891_v45  ;;  %v2893_v48 = vpop.eup %2892 }
0x1490   :  { %2898 = vrcp.f32 %v2063_v46 }
0x1497   :  { %v2895_v49 = vpop.eup %2894 }
0x1498   :  { %v1970_v50 = vsel %vm3084_vm5, %v2893_v48, %v2895_v49  ;;  %v2897_v51 = vpop.eup %2896 }
0x1499   :  { %1973 = vrot.lane.b32.xlu1 %v1970_v50, %s2990_s0  ;;  %v1971_v8 = vmul.f32 %v1970_v50, %v3479_v33 }
0x149d   :  { %v2899_v31 = vpop.eup %2898 }
0x149e   :  { %v2066_v52 = vsel %vm3084_vm5, %v2897_v51, %v2899_v31 }
0x149f   :  { %2069 = vrot.lane.b32.xlu0 %v2066_v52, %s2990_s0  ;;  %v2067_v11 = vmul.f32 %v2066_v52, %v3483_v35 }
0x150b   :  { %v1974_v53 = vpop.permute.xlu1 %1973 }
0x150c   :  { %v1976_v6 = vmul.f32 %v1974_v53, %v1970_v50 }
0x150e   :  { %1978 = vrot.lane.b32.xlu1 %v1976_v6, %s2991_s5 }
0x1511   :  { %v2070_v24 = vpop.permute.xlu0 %2069 }
0x1512   :  { %v2072_v7 = vmul.f32 %v2070_v24, %v2066_v52 }
0x1514   :  { %2074 = vrot.lane.b32.xlu0 %v2072_v7, %s2991_s5 }
0x1580   :  { %v1979_v9 = vpop.permute.xlu1 %1978 }
0x1581   :  { %v1981_v10 = vadd.f32 %v1979_v9, %v1971_v8 }
0x1583   :  { %2900 = vtanh.f32 %v1981_v10 }
0x1586   :  { %v2075_v12 = vpop.permute.xlu0 %2074 }
0x1587   :  { %v2077_v58 = vadd.f32 %v2075_v12, %v2067_v11 }
0x1589   :  { %2902 = vtanh.f32 %v2077_v58 }
0x1590   :  { %v2901_v13 = vpop.eup %2900 }
0x1591   :  { %1984 = vrot.lane.b32.xlu1 %v2901_v13, %s2990_s0 }
0x1596   :  { %v2903_v15 = vpop.eup %2902 }
0x1597   :  { %2080 = vrot.lane.b32.xlu0 %v2903_v15, %s2990_s0 }
0x1603   :  { %v1985_v30 = vpop.permute.xlu1 %1984 }
0x1604   :  { %v1987_v14 = vmul.f32 %v1985_v30, %v1970_v50 }
0x1606   :  { %2160 = vrot.lane.b32.xlu1 %v1987_v14, %s2991_s5 }
0x1609   :  { %v2081_v16 = vpop.permute.xlu0 %2080 }
0x160a   :  { %v2083_v18 = vmul.f32 %v2081_v16, %v2066_v52 }
0x160c   :  { %2085 = vrot.lane.b32.xlu0 %v2083_v18, %s2991_s5 }
0x1678   :  { %v2161_v17 = vpop.permute.xlu1 %2160 }
0x1679   :  { %2762 = vmatmul.mubr.msk.f32.vlgmr.msra.gmra.mxu0 %vm258_vm7, %v2161_v17 }
0x167e   :  { %v2086_v19 = vpop.permute.xlu0 %2085 }
0x167f   :  { %2751 = vmatmul.mubr.msk.f32.vlgmr.msra.gmra.mxu1 %vm258_vm7, %v2086_v19 }
0x1680   :  { %2772 = vmatprep.mubr.msk.f32.mxu1 %vm2993_vm6, %v2992_v47  ;;  %2765 = vmatpush3.msra.mxu1 %v2263_v56 }
0x1681   :  { %2766 = vmatprep.subr.mxu1 %v2992_v47 }
0x1682   :  { %2767 = vmatpush3.msra.mxu1 %v2262_v57 }
0x1683   :  { %2768 = vmatprep.subr.mxu1 %v2992_v47 }
0x1684   :  { %2769 = vmatpush3.msra.mxu1 %v2261_v36 }
0x1685   :  { %2770 = vmatprep.subr.mxu1 %v2992_v47 }
0x1686   :  { %2771 = vmatpush3.msra.mxu1 %v2260_v59 }
0x1739   :  { %v2230_v20 = vpop.f32.mrf.mxu0 }
0x173b   :  { %v2763_v21 = vpop.f32.mrf.mxu0 }
0x173f   :  { %v2155_v33 = vpop.f32.mrf.mxu1 }
0x1740   :  { %v2156_v34 = vadd.f32 %v2920_v23, %v2155_v33 }
0x1741   :  { %v2752_v22 = vpop.f32.mrf.mxu1 }
0x1742   :  { %v2234_v35 = vadd.f32 %v2230_v20, %v2156_v34 }
0x1744   :  { %v2396_v37 = vmul.f32 -1.442695, %v2234_v35 }
0x1746   :  { %2904 = vpow2.f32 %v2396_v37 }
0x1747   :  { %2906 = vtanh.f32 %v2234_v35 }
0x1753   :  { %v2905_v38 = vpop.eup %2904 }
0x1754   :  { %v2239_v39 = vadd.f32 1.0, %v2905_v38  ;;  %v2907_v40 = vpop.eup %2906 }
0x1756   :  { %2908 = vrcp.f32 %v2239_v39 }
0x1763   :  { %v2909_v41 = vpop.eup %2908 }
0x1764   :  { %v2242_v42 = vsel %vm3084_vm5, %v2907_v40, %v2909_v41 }
0x1765   :  { %2245 = vrot.lane.b32.xlu0 %v2242_v42, %s2990_s0  ;;  %v2243_v44 = vmul.f32 %v2242_v42, %v1981_v10 }
0x17d7   :  { %v2246_v28 = vpop.permute.xlu0 %2245 }
0x17d8   :  { %v2248_v43 = vmul.f32 %v2246_v28, %v2242_v42 }
0x17da   :  { %2250 = vrot.lane.b32.xlu1 %v2248_v43, %s2991_s5 }
0x184c   :  { %v2251_v54 = vpop.permute.xlu1 %2250 }
0x184d   :  { %v2253_v55 = vadd.f32 %v2251_v54, %v2243_v44 }
0x184f   :  { %2910 = vtanh.f32 %v2253_v55 }
0x185c   :  { %v2911_v27 = vpop.eup %2910 }
0x185d   :  { %2256 = vrot.lane.b32.xlu0 %v2911_v27, %s2990_s0 }
0x18cf   :  { %v2257_v60 = vpop.permute.xlu0 %2256 }
0x18d0   :  { %v2259_v61 = vmul.f32 %v2257_v60, %v2242_v42 }
0x18d2   :  { %2272 = vrot.lane.b32.xlu1 %v2259_v61, %s2991_s5 }
0x1944   :  { %v2273_v62 = vpop.permute.xlu1 %2272 }
0x1945   :  { %2773 = vmatmul.mubr.msk.f32.vlgmr.msra.gmra.mxu1 %vm258_vm7, %v2273_v62 }
0x1a05   :  { %v2342_v23 = vpop.f32.mrf.mxu1 }
0x1a06   :  { %v2343_v0 = vadd.f32 %v2397_v63, %v2342_v23 }
0x1a07   :  { %v2774_v1 = vpop.f32.mrf.mxu1 }
0x1a08   :  { %2347 = vst.msk [vmem:[%s3594_s9] sm:$0x3] %vm2346_vm8, %v2343_v0 }
0x1a09   :  { %2352 = vsyncpa [#allocation4], 1 }
0x1a0a   :  { %2353 = vsyncpa [#allocation6], 1 }

</bundles_post_ra>
